<compile_context>
chip_gen: v7x
topology: tpu7x:2x2x1
jax: 0.10.0
libtpu: 0.0.40
codegen_flags: <defaults>
</compile_context>

<pallas_src>
import functools
import math

import numpy as np

import jax
import jax.numpy as jnp
from jax.experimental import pallas as pl
from jax.experimental.pallas import tpu as pltpu


# ----------------------------------------------------------------------------
# Helpers
# ----------------------------------------------------------------------------
def _round_up(x, m):
    return ((x + m - 1) // m) * m


def _cart2sph(x, y, z):
    hxy = jnp.hypot(x, y)
    azimuth = jnp.arctan2(y, x)
    elevation = jnp.arctan2(z, hxy)
    distance = jnp.hypot(hxy, z)
    return azimuth, elevation, distance


# ----------------------------------------------------------------------------
# Pallas kernel: one (TR, GF) output slab, fully via one MXU matmul.
# ----------------------------------------------------------------------------
def _mpe_kernel(x_ref, w_ref, o_ref, *, gf, take_cos):
    """x_ref: (TR, K) packed/folded per-mic features (zero padded rows/cols).
    w_ref: (K, 2*GF) block-diagonal constants ([:, :GF] phase, [:, GF:] scale).
    o_ref: (TR, GF) lane-dense output slab (row-major == (TR*G, F))."""
    prod = jnp.dot(
        x_ref[...], w_ref[...],
        preferred_element_type=jnp.float32,
        precision=jax.lax.Precision.HIGHEST,   # keep full f32 accuracy on the MXU
    )
    arg = prod[:, :gf]
    scale = prod[:, gf:]
    if take_cos:
        # FM: cos(beta*v*angle + bias); sin handled via bias = -pi/2.
        # Note: cos lowers to a VPU range-reduction + polynomial (no EUP sin/cos).
        o_ref[...] = (scale * jnp.cos(arg)).astype(o_ref.dtype)
    else:
        # PM: angle-addition identity already applied -> pure VPU multiply.
        o_ref[...] = (scale * arg).astype(o_ref.dtype)


# ----------------------------------------------------------------------------
# Module
# ----------------------------------------------------------------------------
class MicrophonePositionalEncoding:
    """JAX/Pallas port of the PyTorch MicrophonePositionalEncoding module."""

    def __init__(self, feature, MPE_type, alpha=7, beta=4, out_dtype=jnp.float32):
        assert MPE_type in ("FM", "PM"), "MPE_type must be either 'FM' or 'PM'."
        assert feature % 4 == 0
        self.feature = int(feature)
        self.MPE_type = MPE_type
        self.alpha = float(alpha)
        self.beta = float(beta)
        self.out_dtype = out_dtype

        f4 = feature // 4
        # torch: np.linspace(0, 1, feature//4, endpoint=False) == arange(f4)/f4
        v = (np.arange(f4, dtype=np.float32) / np.float32(f4)).astype(np.float32)
        self.v = jnp.asarray(v)   # kept for the pure-JAX reference

        z = np.zeros((f4,), np.float32)
        o = np.ones((f4,), np.float32)
        half_pi = np.float32(np.pi / 2.0)

        if MPE_type == "FM":
            # packed per-mic features: [az, el, dist, 1]
            P = 4
            dist_row = 2
            w_arg_f = np.stack([
                self.beta * np.concatenate([v, v, z, z]),            # az weights
                self.beta * np.concatenate([z, z, v, v]),            # el weights
                np.zeros((feature,), np.float32),                    # dist (unused)
                np.concatenate([z, -half_pi * o, z, -half_pi * o]),  # phase bias (sin)
            ]).astype(np.float32)                                    # (4, F)
        else:
            # packed per-mic features: [cos az, sin az, cos el, sin el, dist]
            # cos(a + c) = cos a cos c - sin a sin c ; sin(a + c) = sin a cos c + cos a sin c
            P = 5
            dist_row = 4
            c = (2.0 * np.pi * self.beta * v).astype(np.float32)
            cc = np.cos(c).astype(np.float32)
            sc = np.sin(c).astype(np.float32)
            w_arg_f = np.stack([
                np.concatenate([cc,  sc, z, z]),     # cos(az) weights
                np.concatenate([-sc, cc, z, z]),     # sin(az) weights
                np.concatenate([z, z, cc,  sc]),     # cos(el) weights
                np.concatenate([z, z, -sc, cc]),     # sin(el) weights
                np.zeros((feature,), np.float32),    # dist (unused in arg half)
            ]).astype(np.float32)                    # (5, F)

        w_dist_f = np.zeros((P, feature), np.float32)
        w_dist_f[dist_row, :] = np.float32(self.alpha)

        # Fold factor: pack G mic rows per output row so the output lane width is
        # ~512 (or at least 128) -> long unmasked stores.  Falls back to G = 1.
        if feature <= 512 and 512 % feature == 0:
            G = 512 // feature
        elif feature < 128 and 128 % feature == 0:
            G = 128 // feature
        else:
            G = 1   # lane width may not be a multiple of 128 -> masked stores (perf only)

        self.groups = G
        self.pack = P
        GF = G * feature
        K = P * G
        Kp = _round_up(K, 8)                 # pad matmul K dim to a sublane multiple
        self.gf = GF
        self.k_pad = Kp

        # Block-diagonal fused constant: [:, :GF] -> phase/combination, [:, GF:] -> scale.
        W = np.zeros((Kp, 2 * GF), np.float32)
        for g in range(G):
            rs = slice(g * P, (g + 1) * P)
            W[rs, g * feature:(g + 1) * feature] = w_arg_f
            W[rs, GF + g * feature:GF + (g + 1) * feature] = w_dist_f
        self.W = jnp.asarray(W)

    def __call__(self, mic_coordinate):
        # mic_coordinate: (..., 3)
        mic_coordinate = mic_coordinate.astype(jnp.float32)
        lead_shape = mic_coordinate.shape[:-1]
        n = math.prod(lead_shape) if lead_shape else 1

        flat = mic_coordinate.reshape(n, 3)
        az, el, dist = _cart2sph(flat[:, 0], flat[:, 1], flat[:, 2])

        if self.MPE_type == "FM":
            feats = jnp.stack([az, el, dist, jnp.ones_like(az)], axis=-1)       # (N, 4)
        else:
            # O(N) trig here replaces O(N*F) in-kernel transcendentals (angle identity).
            feats = jnp.stack(
                [jnp.cos(az), jnp.sin(az), jnp.cos(el), jnp.sin(el), dist], axis=-1)  # (N, 5)

        G, P, F, GF, Kp = self.groups, self.pack, self.feature, self.gf, self.k_pad

        r = -(-n // G)                                   # folded output rows
        # Row tile: amortize per-step overhead, stay well under scoped-VMEM defaults
        # on all generations, and give the grid >= 2 steps when possible (v7x, 2 TCs).
        bytes_per_row = 4 * (GF + Kp)                    # f32 output + input per row
        tr_cap = max(8, min(1024, ((6 << 20) // (2 * bytes_per_row)) // 8 * 8))
        tr = max(8, min(tr_cap, _round_up(-(-r // 2), 8)))
        r_pad = _round_up(r, tr)
        n_pad = r_pad * G

        if n_pad != n:
            # Zero rows: zero features -> zero scale -> zero output; sliced off below.
            feats = jnp.pad(feats, ((0, n_pad - n), (0, 0)))
        x = feats.reshape(r_pad, P * G)                  # fold G mics per row
        if Kp != P * G:
            x = jnp.pad(x, ((0, 0), (0, Kp - P * G)))    # pad K dim to sublane multiple

        kernel = functools.partial(_mpe_kernel, gf=GF,
                                   take_cos=(self.MPE_type == "FM"))
        out = pl.pallas_call(
            kernel,
            out_shape=jax.ShapeDtypeStruct((r_pad, GF), self.out_dtype),
            grid=(r_pad // tr,),
            in_specs=[
                pl.BlockSpec((tr, Kp), lambda i: (i, 0)),       # packed/folded mic rows
                pl.BlockSpec((Kp, 2 * GF), lambda i: (0, 0)),   # fused constant (resident)
            ],
            out_specs=pl.BlockSpec((tr, GF), lambda i: (i, 0)),
            compiler_params=pltpu.CompilerParams(
                dimension_semantics=("parallel",),
            ),
        )(x, self.W)

        # (R_pad, G*F) row-major == (N_pad, F): free reinterpretation of the fold.
        pe = out.reshape(n_pad, F)[:n]
        return pe.reshape(*lead_shape, F)


# ----------------------------------------------------------------------------
# Pure-JAX reference (mirrors the PyTorch forward) for a correctness check.
# ----------------------------------------------------------------------------
def _reference(mic_coordinate, v, mpe_type, alpha, beta):
    azimuth, elevation, distance = _cart2sph(
        mic_coordinate[..., 0], mic_coordinate[..., 1], mic_coordinate[..., 2]
    )
    azimuth = azimuth[..., None]
    elevation = elevation[..., None]
    distance = distance[..., None]
    v = v.reshape(1, 1, -1)
    if mpe_type == "FM":
        pe_list = [
            jnp.cos(beta * azimuth * v),
            jnp.sin(beta * azimuth * v),
            jnp.cos(beta * elevation * v),
            jnp.sin(beta * elevation * v),
        ]
    else:
        pe_list = [
            jnp.cos(azimuth + 2 * jnp.pi * beta * v),
            jnp.sin(azimuth + 2 * jnp.pi * beta * v),
            jnp.cos(elevation + 2 * jnp.pi * beta * v),
            jnp.sin(elevation + 2 * jnp.pi * beta * v),
        ]
    return distance * alpha * jnp.concatenate(pe_list, axis=-1)


if __name__ == "__main__":
    key = jax.random.PRNGKey(0)
    feature = 32                      # F (F // 4 = 8 frequencies)

    # Small canonical case plus an odd-sized case that exercises row padding.
    keys = jax.random.split(key, 2)
    shapes = [(2, 4, 3), (3, 5, 3)]   # (batch, num_mics, xyz)

    ok = True
    for k, shp in zip(keys, shapes):
        mic_coordinate = jax.random.normal(k, shp, dtype=jnp.float32)
        for mpe_type in ("FM", "PM"):
            mod = MicrophonePositionalEncoding(feature, mpe_type, alpha=7, beta=4)
            pe = jax.block_until_ready(mod(mic_coordinate))
            ref = jax.block_until_ready(
                _reference(mic_coordinate, mod.v, mpe_type, mod.alpha, mod.beta)
            )
            if pe.shape != (*shp[:-1], feature):
                ok = False
                print(f"shape mismatch ({mpe_type}, {shp}): got {pe.shape}")
            if not bool(jnp.allclose(pe, ref, atol=5e-4, rtol=5e-4)):
                ok = False
                err = float(jnp.max(jnp.abs(pe - ref)))
                print(f"value mismatch ({mpe_type}, {shp}): max abs err = {err:.3e}")

    if ok:
        print("KERNEL_OK")
</pallas_src>

<mosaic_0001>
module attributes {stable_mosaic.version = 11 : i64} {
  func.func @_mpe_kernel(%arg0: i32, %arg1: memref<8x64xf32, #tpu.memory_space<vmem>>, %arg2: memref<64x1024xf32, #tpu.memory_space<vmem>>, %arg3: memref<8x512xf32, #tpu.memory_space<vmem>>) attributes {dimension_semantics = [#tpu.dimension_semantics<parallel>], iteration_bounds = array<i64: 1>, scalar_prefetch = 0 : i64, scratch_operands = 0 : i64, tpu.core_type = #tpu.core_type<tc>, window_params = [{transform_indices = @transform_0, window_bounds = array<i64: 8, 64>}, {pipeline_mode = #tpu.pipeline_mode<synchronous>, transform_indices = @transform_1, window_bounds = array<i64: 64, 1024>}, {transform_indices = @transform_2, window_bounds = array<i64: 8, 512>}]} {
    %c0 = arith.constant 0 : index
    %c0_0 = arith.constant 0 : index
    %0 = vector.load %arg1[%c0, %c0_0] : memref<8x64xf32, #tpu.memory_space<vmem>>, vector<8x64xf32>
    %c0_1 = arith.constant 0 : index
    %c0_2 = arith.constant 0 : index
    %1 = vector.load %arg2[%c0_1, %c0_2] : memref<64x1024xf32, #tpu.memory_space<vmem>>, vector<64x1024xf32>
    %cst = arith.constant dense<0.000000e+00> : vector<8x1024xf32>
    %2 = tpu.matmul %0, %1, %cst {dimension_numbers = #tpu.dot_dimension_numbers<[1], [0], [0], [1], [0, 0, 1, 1], [], []>, precision = #tpu.contract_precision<fp32>} : vector<8x64xf32>, vector<64x1024xf32>, vector<8x1024xf32> -> vector<8x1024xf32>
    %3 = vector.extract_strided_slice %2 {offsets = [0, 0], sizes = [8, 512], strides = [1, 1]} : vector<8x1024xf32> to vector<8x512xf32>
    %4 = vector.extract_strided_slice %2 {offsets = [0, 512], sizes = [8, 512], strides = [1, 1]} : vector<8x1024xf32> to vector<8x512xf32>
    %5 = math.cos %3 : vector<8x512xf32>
    %6 = arith.mulf %4, %5 : vector<8x512xf32>
    %c0_3 = arith.constant 0 : index
    %c0_4 = arith.constant 0 : index
    %7 = vector.load %arg3[%c0_3, %c0_4] : memref<8x512xf32, #tpu.memory_space<vmem>>, vector<8x512xf32>
    tpu.vector_store %arg3[%c0_3, %c0_4], %6 {strides = array<i32>} : memref<8x512xf32, #tpu.memory_space<vmem>>, vector<8x512xf32>,
    return
  }
  func.func @transform_0(%arg0: i32) -> (i32, i32) {
    %c0_i32 = arith.constant 0 : i32
    %c0_i32_0 = arith.constant 0 : i32
    return %arg0, %c0_i32 : i32, i32
  }
  func.func @transform_1(%arg0: i32) -> (i32, i32) {
    %c0_i32 = arith.constant 0 : i32
    %c0_i32_0 = arith.constant 0 : i32
    %c0_i32_1 = arith.constant 0 : i32
    return %c0_i32, %c0_i32_0 : i32, i32
  }
  func.func @transform_2(%arg0: i32) -> (i32, i32) {
    %c0_i32 = arith.constant 0 : i32
    %c0_i32_0 = arith.constant 0 : i32
    return %arg0, %c0_i32 : i32, i32
  }
}

</mosaic_0001>

<bundles_post_ra>
// kernel: tpu_custom_call.1
= control target key start
LH: loop header
LB: loop body
LE: loop exit
PB: predicated region body
PF: predicated region fallthrough
CT: control target
= control target key end

     0   :  { %7 = vsyncpa [#allocation3], 0  ;;  %s4834_s0 = inlined_call_operand.hbm [shape: f32[8,64], index: 0, kind: input, shape index: {}]   ;;  %s4835_s1 = inlined_call_operand.hbm [shape: f32[64,1024], index: 1, kind: input, shape index: {}]   ;;  %s4836_s2 = inlined_call_operand.hbm [shape: f32[8,512], index: 2, kind: output, shape index: {}]  }
   0x1   :  { %8 = vsyncpa [#allocation6], 0 }
   0x2   :  { %9 = vsyncpa [#allocation4], 0  ;;  %s3687_s9 = smov [#allocation2]   ;;  %s3688_s11 = smov [#allocation5]  }
   0x3   :  { %s16_s10 = sshll.u32 %s3687_s9, 4  ;;  %s25_s12 = sshll.u32 %s3688_s11, 4  ;;  %s17_s10 = int_to_ptr.vmem [resolvable:$true] %s16_s10  ;;  %s3714_s12 = int_to_ptr.vmem [resolvable:$true] %s25_s12 }
   0x4   :  { %s3615_s15 = scalar_lea.hbm %s4834_s0, 128 }
   0x5   :  { %p3616_p0 = scmp.ne.s32.totalorder %s4834_s0, %s3615_s15  ;;  %p3619_p1 = scmp.lt.u32.totalorder %s3615_s15, %s4834_s0 }
   0x7   :  { %p3621_p2 = pnand %p3619_p1, %p3616_p0 }
   0x9   :  { %3624 = shalt.err (!%p3621_p2)
}
   0xa   :  { %s3625_s20 = scalar_lea.vmem %s17_s10, 128  ;;  %p3630_p4 = scmp.lt.s32.totalorder %s17_s10, %s17_s10 }
   0xb   :  { %p3626_p3 = scmp.ne.s32.totalorder %s17_s10, %s3625_s20  ;;  %p3631_p5 = scmp.lt.s32.totalorder %s3625_s20, %s3625_s20 }
   0xd   :  { %p3632_p6 = por %p3631_p5, %p3630_p4 }
   0xf   :  { %p3633_p7 = pnand %p3632_p6, %p3626_p3 }
  0x11   :  { %3636 = shalt.err (!%p3633_p7)
}
  0x12   :  { %19 = dma.hbm_to_vmem [thread:$0]  %s4834_s0, 128, %s17_s10, [#allocation3]  }
  0x13   :  { %s3637_s25 = scalar_lea.hbm %s4835_s1, 8192 }
  0x14   :  { %p3638_p8 = scmp.ne.s32.totalorder %s4835_s1, %s3637_s25  ;;  %p3641_p9 = scmp.lt.u32.totalorder %s3637_s25, %s4835_s1 }
  0x16   :  { %p3643_p10 = pnand %p3641_p9, %p3638_p8 }
  0x18   :  { %3646 = shalt.err (!%p3643_p10)
}
  0x19   :  { %s3647_s30 = scalar_lea.vmem %s3714_s12, 8192  ;;  %p3652_p12 = scmp.lt.s32.totalorder %s3714_s12, %s3714_s12 }
  0x1a   :  { %p3648_p11 = scmp.ne.s32.totalorder %s3714_s12, %s3647_s30  ;;  %p3653_p13 = scmp.lt.s32.totalorder %s3647_s30, %s3647_s30 }
  0x1c   :  { %p3654_p0 = por %p3653_p13, %p3652_p12 }
  0x1e   :  { %p3655_p1 = pnand %p3654_p0, %p3648_p11 }
  0x20   :  { %3658 = shalt.err (!%p3655_p1)
}
  0x21   :  { %s3689_s0 = smov 1024   ;;  %s3690_s3 = smov 64  }
  0x22   :  { %31 = dma.hbm_to_vmem [thread:$0]  %s4835_s1, 8192, %s3714_s12, [#allocation6], %s3689_s0, %s3689_s0, %s3690_s3  }
  0x23   :  { %3681 = dma.done.wait [#allocation3], 128  }
  0x24   :  { %3682 = vsyncadd [#allocation3], 4294967168 }
  0x25   :  { %3683 = dma.done.wait [#allocation6], 8192  }
  0x26   :  { %3684 = vsyncadd [#allocation6], 4294959104  ;;  %v4840_v0 = vmov 0.0   ;;  %v40_v1 = vld [vmem:[#allocation5 + $0x8] sm:$0xff]  ;;  %v42_v3 = vld [vmem:[#allocation5 + $0x18] sm:$0xff]  ;;  %vm103_vm0 = vcmask 523264  }
  0x27   :  { %187 = vmatprep.mubr.f32.mxu0 %v4840_v0  ;;  %834 = vmatprep.mubr.f32.mxu1 %v4840_v0  ;;  %v48_v2 = vld [vmem:[#allocation5 + $0x48] sm:$0xff]  ;;  %v107_v4 = vand.u32 4294901760, %v40_v1  ;;  %v50_v6 = vld [vmem:[#allocation5 + $0x58] sm:$0xff]  ;;  %v754_v7 = vand.u32 4294901760, %v42_v3  ;;  %v39_v8 = vld [vmem:[#allocation5] sm:$0xff]  ;;  %s3698_s1 = smov [#allocation7]  }
  0x28   :  { %v111_v5 = vand.u32 4294901760, %v48_v2  ;;  %v47_v9 = vld [vmem:[#allocation5 + $0x40] sm:$0xff]  ;;  %v758_v10 = vand.u32 4294901760, %v50_v6  ;;  %v109_v11 = vand.u32 4294901760, %v39_v8  ;;  %v41_v13 = vld [vmem:[#allocation5 + $0x10] sm:$0xff]  ;;  %v56_v15 = vld [vmem:[#allocation5 + $0x88] sm:$0xff] }
  0x29   :  { %v113_v12 = vand.u32 4294901760, %v47_v9  ;;  %v49_v14 = vld [vmem:[#allocation5 + $0x50] sm:$0xff]  ;;  %v3749_v17 = vsub.f32 %v40_v1, %v107_v4  ;;  %v3753_v19 = vsub.f32 %v42_v3, %v754_v7  ;;  %v64_v20 = vld [vmem:[#allocation5 + $0xc8] sm:$0xff]  ;;  %v58_v21 = vld [vmem:[#allocation5 + $0x98] sm:$0xff]  ;;  %v756_v29 = vand.u32 4294901760, %v41_v13  ;;  %s3121_s6 = sshll.u32 %s3698_s1, 4  ;;  %s3122_s6 = int_to_ptr.vmem [resolvable:$true] %s3121_s6 }
  0x2a   :  { %v3747_v16 = vpack.c.bf16 %v111_v5, %v107_v4  ;;  %v3751_v18 = vsub.f32 %v48_v2, %v111_v5  ;;  %v66_v22 = vld [vmem:[#allocation5 + $0xd8] sm:$0xff]  ;;  %v3755_v23 = vpack.c.bf16 %v758_v10, %v754_v7  ;;  %v3757_v24 = vsub.f32 %v50_v6, %v758_v10  ;;  %v55_v27 = vld [vmem:[#allocation5 + $0x80] sm:$0xff]  ;;  %v57_v37 = vld [vmem:[#allocation5 + $0x90] sm:$0xff]  ;;  %s3659_s7 = scalar_lea.vmem %s3122_s6, 512  ;;  %p3664_p3 = scmp.lt.s32.totalorder %s3122_s6, %s3122_s6 }
  0x2b   :  { %v3759_v25 = vpack.c.bf16 %v113_v12, %v109_v11  ;;  %v3761_v26 = vsub.f32 %v39_v8, %v109_v11  ;;  %v3764_v28 = vsub.f32 %v47_v9, %v113_v12  ;;  %v760_v30 = vand.u32 4294901760, %v49_v14  ;;  %v63_v32 = vld [vmem:[#allocation5 + $0xc0] sm:$0xff]  ;;  %v65_v38 = vld [vmem:[#allocation5 + $0xd0] sm:$0xff]  ;;  %v72_v43 = vld [vmem:[#allocation5 + $0x108] sm:$0xff]  ;;  %p3660_p2 = scmp.ne.s32.totalorder %s3122_s6, %s3659_s7  ;;  %p3665_p4 = scmp.lt.s32.totalorder %s3659_s7, %s3659_s7 }
  0x2c   :  { %3148 = vmatprep.subr.bf16.mxu0 %v3747_v16  ;;  %v115_v31 = vand.u32 4294901760, %v56_v15  ;;  %3244 = vmatprep.subr.bf16.mxu1 %v3755_v23  ;;  %v119_v33 = vand.u32 4294901760, %v64_v20  ;;  %v762_v34 = vand.u32 4294901760, %v58_v21  ;;  %v766_v35 = vand.u32 4294901760, %v66_v22  ;;  %v80_v44 = vld [vmem:[#allocation5 + $0x148] sm:$0xff]  ;;  %v74_v45 = vld [vmem:[#allocation5 + $0x118] sm:$0xff] }
  0x2d   :  { %3150 = vmatpush1.bf16.msra.mxu0 %v3759_v25  ;;  %v117_v36 = vand.u32 4294901760, %v55_v27  ;;  %v3768_v39 = vpack.c.bf16 %v760_v30, %v756_v29  ;;  %v3770_v40 = vsub.f32 %v41_v13, %v756_v29  ;;  %v3772_v41 = vsub.f32 %v49_v14, %v760_v30  ;;  %v82_v50 = vld [vmem:[#allocation5 + $0x158] sm:$0xff]  ;;  %v71_v59 = vld [vmem:[#allocation5 + $0x100] sm:$0xff]  ;;  %v73_v2 = vld [vmem:[#allocation5 + $0x110] sm:$0xff]  ;;  %p3666_p5 = por %p3665_p4, %p3664_p3 }
  0x2e   :  { %v3774_v42 = vsub.f32 %v56_v15, %v115_v31  ;;  %v3776_v46 = vpack.c.bf16 %v119_v33, %v115_v31  ;;  %v3778_v47 = vsub.f32 %v64_v20, %v119_v33  ;;  %v3780_v48 = vpack.c.bf16 %v766_v35, %v762_v34  ;;  %v79_v60 = vld [vmem:[#allocation5 + $0x140] sm:$0xff]  ;;  %v81_v3 = vld [vmem:[#allocation5 + $0x150] sm:$0xff]  ;;  %v88_v4 = vld [vmem:[#allocation5 + $0x188] sm:$0xff] }
  0x2f   :  { %v3782_v49 = vsub.f32 %v58_v21, %v762_v34  ;;  %3246 = vmatpush1.bf16.msra.mxu1 %v3768_v39  ;;  %v3785_v51 = vsub.f32 %v66_v22, %v766_v35  ;;  %v121_v52 = vand.u32 4294901760, %v63_v32  ;;  %v3787_v53 = vsub.f32 %v55_v27, %v117_v36  ;;  %v96_v9 = vld [vmem:[#allocation5 + $0x1c8] sm:$0xff]  ;;  %v90_v10 = vld [vmem:[#allocation5 + $0x198] sm:$0xff]  ;;  %v87_v33 = vld [vmem:[#allocation5 + $0x180] sm:$0xff]  ;;  %p3667_p6 = pnand %p3666_p5, %p3660_p2 }
  0x30   :  { %v764_v54 = vand.u32 4294901760, %v57_v37  ;;  %3152 = vmatprep.subr.bf16.mxu0 %v3776_v46  ;;  %3248 = vmatprep.subr.bf16.mxu1 %v3780_v48  ;;  %v768_v55 = vand.u32 4294901760, %v65_v38  ;;  %v123_v56 = vand.u32 4294901760, %v72_v43  ;;  %v127_v57 = vand.u32 4294901760, %v80_v44  ;;  %v98_v11 = vld [vmem:[#allocation5 + $0x1d8] sm:$0xff] }
  0x31   :  { %v770_v58 = vand.u32 4294901760, %v74_v45  ;;  %v3791_v61 = vpack.c.bf16 %v121_v52, %v117_v36  ;;  %v3793_v62 = vsub.f32 %v63_v32, %v121_v52  ;;  %v774_v1 = vand.u32 4294901760, %v82_v50 }
  0x32   :  { %v3795_v63 = vsub.f32 %v57_v37, %v764_v54  ;;  %v3797_v5 = vpack.c.bf16 %v768_v55, %v764_v54  ;;  %v3799_v6 = vsub.f32 %v65_v38, %v768_v55  ;;  %v3801_v7 = vpack.c.bf16 %v127_v57, %v123_v56  ;;  %v95_v38 = vld [vmem:[#allocation5 + $0x1c0] sm:$0xff] }
  0x33   :  { %v3803_v8 = vsub.f32 %v72_v43, %v123_v56  ;;  %3154 = vmatpush1.bf16.msra.mxu0 %v3791_v61  ;;  %v3806_v12 = vsub.f32 %v80_v44, %v127_v57  ;;  %v3808_v13 = vpack.c.bf16 %v774_v1, %v770_v58  ;;  %v3810_v14 = vsub.f32 %v74_v45, %v770_v58  ;;  %v89_v43 = vld [vmem:[#allocation5 + $0x190] sm:$0xff] }
  0x34   :  { %v3812_v15 = vsub.f32 %v82_v50, %v774_v1  ;;  %3250 = vmatpush1.bf16.msra.mxu1 %v3797_v5  ;;  %3156 = vmatprep.subr.bf16.mxu0 %v3801_v7  ;;  %v125_v20 = vand.u32 4294901760, %v71_v59  ;;  %v129_v21 = vand.u32 4294901760, %v79_v60  ;;  %v772_v22 = vand.u32 4294901760, %v73_v2  ;;  %v97_v44 = vld [vmem:[#allocation5 + $0x1d0] sm:$0xff] }
  0x35   :  { %v776_v27 = vand.u32 4294901760, %v81_v3  ;;  %3252 = vmatprep.subr.bf16.mxu1 %v3808_v13  ;;  %v131_v29 = vand.u32 4294901760, %v88_v4  ;;  %v135_v30 = vand.u32 4294901760, %v96_v9  ;;  %v778_v31 = vand.u32 4294901760, %v90_v10 }
  0x36   :  { %v782_v32 = vand.u32 4294901760, %v98_v11  ;;  %v3817_v34 = vpack.c.bf16 %v129_v21, %v125_v20  ;;  %v3819_v35 = vsub.f32 %v71_v59, %v125_v20  ;;  %v3821_v36 = vsub.f32 %v79_v60, %v129_v21 }
  0x37   :  { %v3823_v37 = vpack.c.bf16 %v776_v27, %v772_v22  ;;  %v3825_v45 = vsub.f32 %v73_v2, %v772_v22  ;;  %v3827_v50 = vsub.f32 %v81_v3, %v776_v27  ;;  %v3829_v52 = vpack.c.bf16 %v135_v30, %v131_v29 }
  0x38   :  { %v3831_v54 = vsub.f32 %v88_v4, %v131_v29  ;;  %3158 = vmatpush1.bf16.msra.mxu0 %v3817_v34  ;;  %v3835_v55 = vsub.f32 %v96_v9, %v135_v30  ;;  %v3837_v56 = vpack.c.bf16 %v782_v32, %v778_v31  ;;  %v3839_v57 = vsub.f32 %v90_v10, %v778_v31  ;;  %v38_v10 = vld [vmem:[#allocation2] sm:$0xff] }
  0x39   :  { %4933 = vst [vmem:[#allocation11_spill] sm:$0xff] %v3823_v37  ;;  %4934 = vst [vmem:[#allocation12_spill] sm:$0xff] %v3829_v52  ;;  %3254 = vmatpush1.bf16.msra.mxu1 %v3823_v37  ;;  %v133_v58 = vand.u32 4294901760, %v87_v33  ;;  %3160 = vmatprep.subr.bf16.mxu0 %v3829_v52  ;;  %v3842_v59 = vsub.f32 %v98_v11, %v782_v32  ;;  %v137_v60 = vand.u32 4294901760, %v95_v38  ;;  %v780_v1 = vand.u32 4294901760, %v89_v43 }
  0x3a   :  { %4935 = vst [vmem:[#allocation13_spill] sm:$0xff] %v3837_v56  ;;  %v784_v2 = vand.u32 4294901760, %v97_v44  ;;  %3256 = vmatprep.subr.bf16.mxu1 %v3837_v56  ;;  %v4839_v4 = vand.u32 4294901760, %v3749_v17  ;;  %v4838_v9 = vand.u32 4294901760, %v3751_v18  ;;  %v4837_v20 = vand.u32 4294901760, %v3753_v19 }
  0x3b   :  { %v3845_v3 = vsub.f32 %v87_v33, %v133_v58  ;;  %v3850_v21 = vpack.c.bf16 %v137_v60, %v133_v58  ;;  %v3852_v22 = vsub.f32 %v95_v38, %v137_v60  ;;  %v3856_v27 = vsub.f32 %v89_v43, %v780_v1 }
  0x3c   :  { %v3854_v11 = vpack.c.bf16 %v784_v2, %v780_v1  ;;  %v3858_v29 = vsub.f32 %v97_v44, %v784_v2  ;;  %v202_v30 = vsub.f32 %v3749_v17, %v4839_v4  ;;  %v214_v31 = vsub.f32 %v3751_v18, %v4838_v9 }
  0x3d   :  { %4936 = vst [vmem:[#allocation14_spill] sm:$0xff] %v3850_v21  ;;  %v849_v32 = vsub.f32 %v3753_v19, %v4837_v20  ;;  %3162 = vmatpush1.bf16.msra.mxu0 %v3850_v21  ;;  %v4844_v33 = vand.u32 4294901760, %v3757_v24  ;;  %v105_v38 = vsel %vm103_vm0, %v38_v10, 0  ;;  %v4847_v43 = vand.u32 4294901760, %v3761_v26 }
  0x3e   :  { %4937 = vst [vmem:[#allocation15_spill] sm:$0xff] %v3854_v11  ;;  %3258 = vmatpush1.bf16.msra.mxu1 %v3854_v11  ;;  %v4848_v44 = vand.u32 4294901760, %v3764_v28  ;;  %v203_v58 = vand.u32 4294901760, %v202_v30  ;;  %v215_v60 = vand.u32 4294901760, %v214_v31  ;;  %v3875_v2 = vand.u32 4294901760, %v105_v38 }
  0x3f   :  { %v850_v1 = vand.u32 4294901760, %v849_v32  ;;  %v861_v20 = vsub.f32 %v3757_v24, %v4844_v33  ;;  %v208_v9 = vsub.f32 %v3761_v26, %v4847_v43  ;;  %v4851_v4 = vand.u32 4294901760, %v3770_v40 }
  0x40   :  { %v220_v10 = vsub.f32 %v3764_v28, %v4848_v44  ;;  %v3163_v0 = vpack.c.bf16 %v215_v60, %v203_v58  ;;  %v3888_v30 = vsub.f32 %v105_v38, %v3875_v2  ;;  %v4854_v31 = vand.u32 4294901760, %v3772_v41 }
  0x41   :  { %v4855_v32 = vand.u32 4294901760, %v3774_v42  ;;  %v862_v11 = vand.u32 4294901760, %v861_v20  ;;  %v209_v33 = vand.u32 4294901760, %v208_v9  ;;  %v855_v43 = vsub.f32 %v3770_v40, %v4851_v4 }
  0x42   :  { %4938 = vst [vmem:[#allocation16_spill] sm:$0xff] %v3888_v30  ;;  %v221_v21 = vand.u32 4294901760, %v220_v10  ;;  %3164 = vmatprep.subr.bf16.mxu0 %v3163_v0  ;;  %v3896_v44 = vand.u32 4294901760, %v3888_v30  ;;  %v867_v38 = vsub.f32 %v3772_v41, %v4854_v31  ;;  %v4859_v20 = vand.u32 4294901760, %v3778_v47 }
  0x43   :  { %v226_v58 = vsub.f32 %v3774_v42, %v4855_v32  ;;  %v3259_v9 = vpack.c.bf16 %v862_v11, %v850_v1  ;;  %v856_v10 = vand.u32 4294901760, %v855_v43  ;;  %v4858_v56 = vand.u32 4294901760, %v3782_v49 }
  0x44   :  { %4939 = vst [vmem:[#allocation17_spill] sm:$0xff] %v3896_v44  ;;  %v3165_v60 = vpack.c.bf16 %v221_v21, %v209_v33  ;;  %v191_v0 = vsub.f32 %v3888_v30, %v3896_v44  ;;  %v868_v4 = vand.u32 4294901760, %v867_v38  ;;  %v238_v31 = vsub.f32 %v3778_v47, %v4859_v20 }
  0x45   :  { %v227_v37 = vand.u32 4294901760, %v226_v58  ;;  %3260 = vmatprep.subr.bf16.mxu1 %v3259_v9  ;;  %v873_v32 = vsub.f32 %v3782_v49, %v4858_v56  ;;  %v4861_v11 = vand.u32 4294901760, %v3785_v51  ;;  %v4860_v21 = vand.u32 4294901760, %v3787_v53 }
  0x46   :  { %v4862_v33 = vand.u32 4294901760, %v3793_v62  ;;  %v3917_v43 = vand.u32 4294901760, %v191_v0  ;;  %v3261_v1 = vpack.c.bf16 %v868_v4, %v856_v10  ;;  %v239_v38 = vand.u32 4294901760, %v238_v31 }
  0x47   :  { %v4865_v58 = vand.u32 4294901760, %v3795_v63  ;;  %v874_v44 = vand.u32 4294901760, %v873_v32  ;;  %v885_v9 = vsub.f32 %v3785_v51, %v4861_v11  ;;  %v232_v56 = vsub.f32 %v3787_v53, %v4860_v21 }
  0x48   :  { %4940 = vst [vmem:[#allocation18_spill] sm:$0xff] %v3917_v43  ;;  %v244_v20 = vsub.f32 %v3793_v62, %v4862_v33  ;;  %193 = vmatmul.mubr.f32.vlgmr.msra.gmra.mrb[0].mxu0 %v3917_v43  ;;  %840 = vmatmul.mubr.f32.vlgmr.msra.gmra.mrb[0].mxu1 %v3917_v43  ;;  %v3167_v4 = vpack.c.bf16 %v239_v38, %v227_v37  ;;  %v4868_v32 = vand.u32 4294901760, %v3799_v6  ;;  %v4871_v10 = vand.u32 4294901760, %v3803_v8 }
  0x49   :  { %v879_v31 = vsub.f32 %v3795_v63, %v4865_v58  ;;  %3166 = vmatpush1.bf16.msra.mxu0 %v3165_v60  ;;  %3262 = vmatpush1.bf16.msra.mxu1 %v3261_v1  ;;  %v886_v0 = vand.u32 4294901760, %v885_v9  ;;  %v233_v21 = vand.u32 4294901760, %v232_v56  ;;  %v4869_v33 = vand.u32 4294901760, %v3806_v12 }
  0x4a   :  { %v245_v11 = vand.u32 4294901760, %v244_v20  ;;  %3168 = vmatprep.subr.bf16.mxu0 %v3167_v4  ;;  %v891_v37 = vsub.f32 %v3799_v6, %v4868_v32  ;;  %v250_v38 = vsub.f32 %v3803_v8, %v4871_v10  ;;  %v4870_v58 = vand.u32 4294901760, %v3810_v14 }
  0x4b   :  { %v880_v52 = vand.u32 4294901760, %v879_v31  ;;  %v4941_v43 = vmov 0.0   ;;  %v3263_v60 = vpack.c.bf16 %v886_v0, %v874_v44  ;;  %v262_v56 = vsub.f32 %v3806_v12, %v4869_v33 }
  0x4c   :  { %343 = vmatprep.mubr.f32.mxu0 %v4941_v43  ;;  %v3169_v1 = vpack.c.bf16 %v245_v11, %v233_v21  ;;  %v4872_v20 = vand.u32 4294901760, %v3812_v15  ;;  %990 = vmatprep.mubr.f32.mxu1 %v4941_v43  ;;  %v892_v9 = vand.u32 4294901760, %v891_v37  ;;  %v251_v4 = vand.u32 4294901760, %v250_v38 }
  0x4d   :  { %v897_v31 = vsub.f32 %v3810_v14, %v4870_v58  ;;  %v4874_v32 = vand.u32 4294901760, %v3819_v35  ;;  %3264 = vmatprep.subr.bf16.mxu1 %v3263_v60  ;;  %v263_v44 = vand.u32 4294901760, %v262_v56  ;;  %v4873_v21 = vand.u32 4294901760, %v3821_v36 }
  0x4e   :  { %3170 = vmatpush1.bf16.msra.mxu0 %v3169_v1  ;;  %v909_v11 = vsub.f32 %v3812_v15, %v4872_v20  ;;  %v4876_v0 = vand.u32 4294901760, %v3825_v45  ;;  %v3265_v33 = vpack.c.bf16 %v892_v9, %v880_v52  ;;  %v4875_v58 = vand.u32 4294901760, %v3827_v50 }
  0x4f   :  { %v898_v37 = vand.u32 4294901760, %v897_v31  ;;  %v256_v38 = vsub.f32 %v3819_v35, %v4874_v32  ;;  %v3171_v10 = vpack.c.bf16 %v263_v44, %v251_v4  ;;  %v268_v1 = vsub.f32 %v3821_v36, %v4873_v21 }
  0x50   :  { %v910_v60 = vand.u32 4294901760, %v909_v11  ;;  %v903_v56 = vsub.f32 %v3825_v45, %v4876_v0  ;;  %3266 = vmatpush1.bf16.msra.mxu1 %v3265_v33  ;;  %v915_v52 = vsub.f32 %v3827_v50, %v4875_v58  ;;  %v4877_v9 = vand.u32 4294901760, %v3831_v54 }
  0x51   :  { %v257_v20 = vand.u32 4294901760, %v256_v38  ;;  %v4878_v31 = vand.u32 4294901760, %v3835_v55  ;;  %3172 = vmatprep.subr.bf16.mxu0 %v3171_v10  ;;  %v269_v44 = vand.u32 4294901760, %v268_v1  ;;  %v4879_v21 = vand.u32 4294901760, %v3839_v57 }
  0x52   :  { %v3267_v4 = vpack.c.bf16 %v910_v60, %v898_v37  ;;  %v904_v11 = vand.u32 4294901760, %v903_v56  ;;  %v916_v32 = vand.u32 4294901760, %v915_v52  ;;  %v274_v33 = vsub.f32 %v3831_v54, %v4877_v9 }
  0x53   :  { %v286_v38 = vsub.f32 %v3835_v55, %v4878_v31  ;;  %v932_v58 = vand.u32 4294901760, %v3842_v59  ;;  %v3173_v0 = vpack.c.bf16 %v269_v44, %v257_v20  ;;  %v921_v10 = vsub.f32 %v3839_v57, %v4879_v21 }
  0x54   :  { %3268 = vmatprep.subr.bf16.mxu1 %v3267_v4  ;;  %v4880_v37 = vand.u32 4294901760, %v3845_v3  ;;  %v4881_v60 = vand.u32 4294901760, %v3852_v22  ;;  %v3269_v1 = vpack.c.bf16 %v916_v32, %v904_v11  ;;  %v275_v56 = vand.u32 4294901760, %v274_v33 }
  0x55   :  { %v287_v52 = vand.u32 4294901760, %v286_v38  ;;  %v933_v9 = vsub.f32 %v3842_v59, %v932_v58  ;;  %3174 = vmatpush1.bf16.msra.mxu0 %v3173_v0  ;;  %v922_v31 = vand.u32 4294901760, %v921_v10  ;;  %v926_v44 = vand.u32 4294901760, %v3856_v27 }
  0x56   :  { %v280_v20 = vsub.f32 %v3845_v3, %v4880_v37  ;;  %v292_v4 = vsub.f32 %v3852_v22, %v4881_v60  ;;  %3270 = vmatpush1.bf16.msra.mxu1 %v3269_v1  ;;  %v938_v33 = vand.u32 4294901760, %v3858_v29  ;;  %v3179_v60 = vpack.c.bf16 %v3751_v18, %v3749_v17 }
  0x57   :  { %v3175_v32 = vpack.c.bf16 %v287_v52, %v275_v56  ;;  %v934_v11 = vand.u32 4294901760, %v933_v9  ;;  %v927_v0 = vsub.f32 %v3856_v27, %v926_v44  ;;  %v3275_v52 = vpack.c.bf16 %v3757_v24, %v3753_v19 }
  0x58   :  { %v281_v38 = vand.u32 4294901760, %v280_v20  ;;  %v293_v21 = vand.u32 4294901760, %v292_v4  ;;  %v939_v37 = vsub.f32 %v3858_v29, %v938_v33  ;;  %v3181_v20 = vpack.c.bf16 %v3764_v28, %v3761_v26 }
  0x59   :  { %3176 = vmatprep.subr.bf16.mxu0 %v3175_v32  ;;  %v3271_v10 = vpack.c.bf16 %v934_v11, %v922_v31  ;;  %v928_v56 = vand.u32 4294901760, %v927_v0  ;;  %v3183_v31 = vpack.c.bf16 %v3778_v47, %v3774_v42  ;;  %v3185_v32 = vpack.c.bf16 %v3793_v62, %v3787_v53 }
  0x5a   :  { %v3177_v1 = vpack.c.bf16 %v293_v21, %v281_v38  ;;  %v940_v9 = vand.u32 4294901760, %v939_v37  ;;  %v3277_v21 = vpack.c.bf16 %v3772_v41, %v3770_v40  ;;  %v3279_v37 = vpack.c.bf16 %v3785_v51, %v3782_v49 }
  0x5b   :  { %3272 = vmatprep.subr.bf16.mxu1 %v3271_v10  ;;  %v3281_v11 = vpack.c.bf16 %v3799_v6, %v3795_v63  ;;  %v3283_v38 = vpack.c.bf16 %v3812_v15, %v3810_v14  ;;  %v3189_v0 = vpack.c.bf16 %v3821_v36, %v3819_v35  ;;  %v3191_v10 = vpack.c.bf16 %v3835_v55, %v3831_v54 }
  0x5c   :  { %3178 = vmatpush1.bf16.msra.mxu0 %v3177_v1  ;;  %v3273_v4 = vpack.c.bf16 %v940_v9, %v928_v56  ;;  %v3285_v1 = vpack.c.bf16 %v3827_v50, %v3825_v45  ;;  %v3287_v56 = vpack.c.bf16 %v3842_v59, %v3839_v57  ;;  %v3193_v9 = vpack.c.bf16 %v3852_v22, %v3845_v3 }
  0x5d   :  { %3180 = vmatprep.subr.bf16.mxu0 %v3179_v60  ;;  %v3187_v60 = vpack.c.bf16 %v3806_v12, %v3803_v8 }
  0x5e   :  { %3274 = vmatpush1.bf16.msra.mxu1 %v3273_v4  ;;  %v4943_v4 = vand.u32 4294901760, %v3749_v17  ;;  %v4952_v17 = vand.u32 4294901760, %v3774_v42  ;;  %v4960_v42 = vand.u32 4294901760, %v3787_v53  ;;  %v4964_v53 = vand.u32 4294901760, %v3795_v63 }
  0x5f   :  { %345 = vmatmul.mubr.f32.vlgmr.msra.gmra.mrb[0].mxu0 %v3875_v2  ;;  %3276 = vmatprep.subr.bf16.mxu1 %v3275_v52  ;;  %v3289_v52 = vpack.c.bf16 %v3858_v29, %v3856_v27  ;;  %v4969_v63 = vand.u32 4294901760, %v3821_v36  ;;  %v4974_v36 = vand.u32 4294901760, %v3839_v57 }
  0x60   :  { %3182 = vmatpush1.bf16.msra.mxu0 %v3181_v20  ;;  %447 = vmatprep.mubr.f32.mxu0 %v4941_v43  ;;  %v4942_v20 = vld [vmem:[#allocation12_spill] sm:$0xff] }
  0x61   :  { %3184 = vmatprep.subr.bf16.mxu0 %v3183_v31  ;;  %992 = vmatmul.mubr.f32.vlgmr.msra.gmra.mrb[0].mxu1 %v3875_v2  ;;  %v4944_v31 = vand.u32 4294901760, %v3751_v18  ;;  %v4953_v18 = vand.u32 4294901760, %v3778_v47  ;;  %v4961_v47 = vand.u32 4294901760, %v3793_v62  ;;  %v4965_v62 = vand.u32 4294901760, %v3799_v6  ;;  %v45_v6 = vld [vmem:[#allocation5 + $0x30] sm:$0xff] }
  0x62   :  { %3278 = vmatpush1.bf16.msra.mxu1 %v3277_v21  ;;  %1094 = vmatprep.mubr.f32.mxu1 %v4941_v43  ;;  %v2050_v57 = vand.u32 4294901760, %v45_v6 }
  0x63   :  { %3280 = vmatprep.subr.bf16.mxu1 %v3279_v37  ;;  %v3211_v21 = vpack.c.bf16 %v4944_v31, %v4943_v4  ;;  %v4945_v37 = vld [vmem:[#allocation11_spill] sm:$0xff]  ;;  %v4955_v4 = vld [vmem:[#allocation17_spill] sm:$0xff] }
  0x64   :  { %3186 = vmatpush1.bf16.msra.mxu0 %v3185_v32  ;;  %v4946_v32 = vld [vmem:[#allocation13_spill] sm:$0xff] }
  0x65   :  { %3188 = vmatprep.subr.bf16.mxu0 %v3187_v60  ;;  %v4947_v60 = vld [vmem:[#allocation14_spill] sm:$0xff] }
  0x66   :  { %3282 = vmatpush1.bf16.msra.mxu1 %v3281_v11  ;;  %v4948_v11 = vand.u32 4294901760, %v3753_v19  ;;  %v4956_v19 = vand.u32 4294901760, %v3770_v40  ;;  %v4962_v40 = vand.u32 4294901760, %v3803_v8  ;;  %v43_v8 = vld [vmem:[#allocation5 + $0x20] sm:$0xff] }
  0x67   :  { %3284 = vmatprep.subr.bf16.mxu1 %v3283_v38  ;;  %v4949_v38 = vand.u32 4294901760, %v3757_v24  ;;  %v4957_v24 = vand.u32 4294901760, %v3772_v41  ;;  %v4963_v41 = vand.u32 4294901760, %v3806_v12  ;;  %v4966_v12 = vand.u32 4294901760, %v3810_v14 }
  0x68   :  { %3190 = vmatpush1.bf16.msra.mxu0 %v3189_v0  ;;  %v4973_v14 = vand.u32 4294901760, %v3835_v55  ;;  %v3321_v55 = vpack.c.bf16 %v938_v33, %v926_v44  ;;  %v61_v33 = vld [vmem:[#allocation5 + $0xb0] sm:$0xff] }
  0x69   :  { %3192 = vmatprep.subr.bf16.mxu0 %v3191_v10  ;;  %v3307_v0 = vpack.c.bf16 %v4949_v38, %v4948_v11  ;;  %v4950_v10 = vand.u32 4294901760, %v3761_v26  ;;  %v3309_v31 = vpack.c.bf16 %v4957_v24, %v4956_v19  ;;  %v4958_v26 = vand.u32 4294901760, %v3782_v49  ;;  %v44_v38 = vld [vmem:[#allocation5 + $0x28] sm:$0xff]  ;;  %v46_v49 = vld [vmem:[#allocation5 + $0x38] sm:$0xff] }
  0x6a   :  { %3286 = vmatpush1.bf16.msra.mxu1 %v3285_v1  ;;  %v4951_v1 = vand.u32 4294901760, %v3764_v28  ;;  %v4959_v28 = vand.u32 4294901760, %v3785_v51  ;;  %v3217_v11 = vpack.c.bf16 %v4961_v47, %v4960_v42  ;;  %v54_v51 = vld [vmem:[#allocation5 + $0x78] sm:$0xff]  ;;  %v4968_v24 = vand.u32 4294901760, %v3819_v35  ;;  %v68_v35 = vld [vmem:[#allocation5 + $0xe8] sm:$0xff] }
  0x6b   :  { %3288 = vmatprep.subr.bf16.mxu1 %v3287_v56  ;;  %v4971_v42 = vand.u32 4294901760, %v3827_v50 }
  0x6c   :  { %3194 = vmatpush1.bf16.msra.mxu0 %v3193_v9  ;;  %v3213_v56 = vpack.c.bf16 %v4951_v1, %v4950_v10  ;;  %v3215_v9 = vpack.c.bf16 %v4953_v18, %v4952_v17  ;;  %v52_v10 = vld [vmem:[#allocation5 + $0x68] sm:$0xff]  ;;  %v3219_v1 = vpack.c.bf16 %v4963_v41, %v4962_v40  ;;  %v51_v18 = vld [vmem:[#allocation5 + $0x60] sm:$0xff]  ;;  %v2052_v40 = vand.u32 4294901760, %v54_v51 }
  0x6d   :  { %3196 = vmatprep.subr.bf16.mxu0 %v3747_v16  ;;  %v1405_v17 = vand.u32 4294901760, %v52_v10  ;;  %v60_v41 = vld [vmem:[#allocation5 + $0xa8] sm:$0xff] }
  0x6e   :  { %3290 = vmatpush1.bf16.msra.mxu1 %v3289_v52  ;;  %v4954_v52 = vld [vmem:[#allocation15_spill] sm:$0xff] }
  0x6f   :  { %450 = vmatmul.mubr.f32.vlgmr.msra.gmra.mrb[0].mxu0 %v3888_v30  ;;  %3292 = vmatprep.subr.bf16.mxu1 %v3755_v23 }
  0x70   :  { %3198 = vmatpush1.bf16.msra.mxu0 %v3759_v25  ;;  %536 = vmatprep.mubr.f32.mxu0 %v4941_v43 }
  0x71   :  { %3200 = vmatprep.subr.bf16.mxu0 %v3776_v46  ;;  %1097 = vmatmul.mubr.f32.vlgmr.msra.gmra.mrb[0].mxu1 %v3888_v30  ;;  %v85_v30 = vld [vmem:[#allocation5 + $0x170] sm:$0xff] }
  0x72   :  { %3294 = vmatpush1.bf16.msra.mxu1 %v3768_v39  ;;  %1183 = vmatprep.mubr.f32.mxu1 %v4941_v43 }
  0x73   :  { %3296 = vmatprep.subr.bf16.mxu1 %v3780_v48 }
  0x74   :  { %3202 = vmatpush1.bf16.msra.mxu0 %v3791_v61 }
  0x75   :  { %3204 = vmatprep.subr.bf16.mxu0 %v3801_v7 }
  0x76   :  { %3298 = vmatpush1.bf16.msra.mxu1 %v3797_v5 }
  0x77   :  { %3300 = vmatprep.subr.bf16.mxu1 %v3808_v13 }
  0x78   :  { %3206 = vmatpush1.bf16.msra.mxu0 %v3817_v34 }
  0x79   :  { %3208 = vmatprep.subr.bf16.mxu0 %v4942_v20 }
  0x7a   :  { %3302 = vmatpush1.bf16.msra.mxu1 %v4945_v37 }
  0x7b   :  { %3304 = vmatprep.subr.bf16.mxu1 %v4946_v32 }
  0x7c   :  { %3210 = vmatpush1.bf16.msra.mxu0 %v4947_v60 }
  0x7d   :  { %3212 = vmatprep.subr.bf16.mxu0 %v3211_v21  ;;  %v3311_v21 = vpack.c.bf16 %v4959_v28, %v4958_v26  ;;  %v53_v26 = vld [vmem:[#allocation5 + $0x70] sm:$0xff]  ;;  %v4970_v28 = vand.u32 4294901760, %v3825_v45  ;;  %v4976_v45 = vand.u32 4294901760, %v3852_v22  ;;  %v4132_v22 = vsub.f32 %v52_v10, %v1405_v17 }
  0x7e   :  { %3306 = vmatpush1.bf16.msra.mxu1 %v4954_v52  ;;  %v2054_v59 = vand.u32 4294901760, %v53_v26 }
  0x7f   :  { %540 = vmatmul.mubr.f32.vlgmr.msra.gmra.mrb[0].mxu0 %v4955_v4  ;;  %3308 = vmatprep.subr.bf16.mxu1 %v3307_v0  ;;  %v3313_v0 = vpack.c.bf16 %v4965_v62, %v4964_v53  ;;  %v3317_v47 = vpack.c.bf16 %v4971_v42, %v4970_v28  ;;  %v3319_v53 = vpack.c.bf16 %v932_v58, %v4974_v36  ;;  %v1403_v62 = vand.u32 4294901760, %v43_v8  ;;  %v59_v28 = vld [vmem:[#allocation5 + $0xa0] sm:$0xff] }
  0x80   :  { %3214 = vmatpush1.bf16.msra.mxu0 %v3213_v56  ;;  %658 = vmatprep.mubr.f32.mxu0 %v4941_v43  ;;  %v1401_v56 = vand.u32 4294901760, %v44_v38  ;;  %v1409_v58 = vand.u32 4294901760, %v60_v41  ;;  %v67_v42 = vld [vmem:[#allocation5 + $0xe0] sm:$0xff]  ;;  %v4150_v36 = vsub.f32 %v53_v26, %v2054_v59 }
  0x81   :  { %3216 = vmatprep.subr.bf16.mxu0 %v3215_v9  ;;  %1187 = vmatmul.mubr.f32.vlgmr.msra.gmra.mrb[0].mxu1 %v4955_v4  ;;  %v4967_v9 = vand.u32 4294901760, %v3812_v15  ;;  %v2048_v15 = vand.u32 4294901760, %v46_v49  ;;  %v77_v4 = vld [vmem:[#allocation5 + $0x130] sm:$0xff] }
  0x82   :  { %3310 = vmatpush1.bf16.msra.mxu1 %v3309_v31  ;;  %1305 = vmatprep.mubr.f32.mxu1 %v4941_v43  ;;  %v3221_v31 = vpack.c.bf16 %v4969_v63, %v4968_v24  ;;  %v4128_v24 = vpack.c.bf16 %v1405_v17, %v1401_v56  ;;  %v1413_v63 = vand.u32 4294901760, %v68_v35  ;;  %v4146_v17 = vpack.c.bf16 %v2054_v59, %v2050_v57 }
  0x83   :  { %3312 = vmatprep.subr.bf16.mxu1 %v3311_v21  ;;  %v3315_v19 = vpack.c.bf16 %v4967_v9, %v4966_v12  ;;  %v4972_v21 = vand.u32 4294901760, %v3831_v54  ;;  %v1407_v12 = vand.u32 4294901760, %v51_v18  ;;  %v62_v54 = vld [vmem:[#allocation5 + $0xb8] sm:$0xff]  ;;  %v4136_v27 = vsub.f32 %v46_v49, %v2048_v15 }
  0x84   :  { %3218 = vmatpush1.bf16.msra.mxu0 %v3217_v11  ;;  %v70_v9 = vld [vmem:[#allocation5 + $0xf8] sm:$0xff]  ;;  %4977 = vst [vmem:[#allocation12_spill] sm:$0xff] %v4128_v24  ;;  %v2056_v29 = vand.u32 4294901760, %v62_v54  ;;  %4980 = vst [vmem:[#allocation14_spill] sm:$0xff] %v4146_v17  ;;  %v1411_v49 = vand.u32 4294901760, %v59_v28 }
  0x85   :  { %3220 = vmatprep.subr.bf16.mxu0 %v3219_v1  ;;  %v3223_v11 = vpack.c.bf16 %v4973_v14, %v4972_v21  ;;  %v4975_v1 = vand.u32 4294901760, %v3845_v3  ;;  %v4130_v3 = vsub.f32 %v44_v38, %v1401_v56  ;;  %v2060_v44 = vand.u32 4294901760, %v70_v9  ;;  %v69_v21 = vld [vmem:[#allocation5 + $0xf0] sm:$0xff]  ;;  %v76_v56 = vld [vmem:[#allocation5 + $0x128] sm:$0xff] }
  0x86   :  { %3314 = vmatpush1.bf16.msra.mxu1 %v3313_v0  ;;  %v4134_v0 = vpack.c.bf16 %v2052_v40, %v2048_v15  ;;  %v4138_v14 = vsub.f32 %v54_v51, %v2052_v40  ;;  %v4142_v38 = vsub.f32 %v43_v8, %v1403_v62  ;;  %v4144_v10 = vsub.f32 %v51_v18, %v1407_v12  ;;  %v84_v15 = vld [vmem:[#allocation5 + $0x168] sm:$0xff]  ;;  %v86_v18 = vld [vmem:[#allocation5 + $0x178] sm:$0xff] }
  0x87   :  { %v3225_v50 = vpack.c.bf16 %v4976_v45, %v4975_v1  ;;  %3316 = vmatprep.subr.bf16.mxu1 %v3315_v19  ;;  %v4140_v19 = vpack.c.bf16 %v1407_v12, %v1403_v62  ;;  %v4152_v51 = vpack.c.bf16 %v1413_v63, %v1409_v58  ;;  %v2058_v40 = vand.u32 4294901760, %v61_v33  ;;  %v78_v1 = vld [vmem:[#allocation5 + $0x138] sm:$0xff]  ;;  %v75_v12 = vld [vmem:[#allocation5 + $0x120] sm:$0xff] }
  0x88   :  { %3222 = vmatpush1.bf16.msra.mxu0 %v3221_v31  ;;  %4978 = vst [vmem:[#allocation11_spill] sm:$0xff] %v4134_v0  ;;  %v4148_v31 = vsub.f32 %v45_v6, %v2050_v57  ;;  %v2062_v8 = vand.u32 4294901760, %v69_v21  ;;  %v4157_v45 = vsub.f32 %v68_v35, %v1413_v63  ;;  %v4159_v6 = vpack.c.bf16 %v2060_v44, %v2056_v29  ;;  %v92_v63 = vld [vmem:[#allocation5 + $0x1a8] sm:$0xff] }
  0x89   :  { %3224 = vmatprep.subr.bf16.mxu0 %v3223_v11  ;;  %4979 = vst [vmem:[#allocation13_spill] sm:$0xff] %v4140_v19  ;;  %v1415_v11 = vand.u32 4294901760, %v67_v42  ;;  %4981 = vst [vmem:[#allocation15_spill] sm:$0xff] %v4152_v51  ;;  %v1417_v62 = vand.u32 4294901760, %v76_v56  ;;  %v4163_v26 = vsub.f32 %v70_v9, %v2060_v44  ;;  %v4165_v57 = vsub.f32 %v59_v28, %v1411_v49 }
  0x8a   :  { %3318 = vmatpush1.bf16.msra.mxu1 %v3317_v47  ;;  %v4155_v47 = vsub.f32 %v60_v41, %v1409_v58  ;;  %4982 = vst [vmem:[#allocation19_spill] sm:$0xff] %v4159_v6  ;;  %v1421_v59 = vand.u32 4294901760, %v84_v15  ;;  %v2064_v35 = vand.u32 4294901760, %v78_v1  ;;  %v2068_v58 = vand.u32 4294901760, %v86_v18  ;;  %v100_v6 = vld [vmem:[#allocation5 + $0x1e8] sm:$0xff] }
  0x8b   :  { %3320 = vmatprep.subr.bf16.mxu1 %v3319_v53  ;;  %v83_v53 = vld [vmem:[#allocation5 + $0x160] sm:$0xff]  ;;  %4983 = vst [vmem:[#allocation20_spill] sm:$0xff] %v4165_v57  ;;  %v4170_v41 = vsub.f32 %v67_v42, %v1415_v11  ;;  %v4176_v9 = vsub.f32 %v61_v33, %v2058_v40  ;;  %v1419_v28 = vand.u32 4294901760, %v75_v12  ;;  %v4180_v42 = vsub.f32 %v69_v21, %v2062_v8 }
  0x8c   :  { %3226 = vmatpush1.bf16.msra.mxu0 %v3225_v50  ;;  %v4161_v50 = vsub.f32 %v62_v54, %v2056_v29  ;;  %v4174_v54 = vpack.c.bf16 %v2062_v8, %v2058_v40  ;;  %v4182_v29 = vsub.f32 %v76_v56, %v1417_v62  ;;  %v2066_v44 = vand.u32 4294901760, %v77_v4  ;;  %v91_v8 = vld [vmem:[#allocation5 + $0x1a0] sm:$0xff] }
  0x8d   :  { %3228 = vmatprep.subr.bf16.mxu0 %v3747_v16  ;;  %v4168_v16 = vpack.c.bf16 %v1415_v11, %v1411_v49  ;;  %4985 = vst [vmem:[#allocation22_spill] sm:$0xff] %v4170_v41  ;;  %4987 = vst [vmem:[#allocation24_spill] sm:$0xff] %v4176_v9  ;;  %v2070_v49 = vand.u32 4294901760, %v85_v30  ;;  %v94_v11 = vld [vmem:[#allocation5 + $0x1b8] sm:$0xff]  ;;  %v4187_v33 = vsub.f32 %v84_v15, %v1421_v59  ;;  %v1425_v40 = vand.u32 4294901760, %v92_v63 }
  0x8e   :  { %3322 = vmatpush1.bf16.msra.mxu1 %v3321_v55  ;;  %4986 = vst [vmem:[#allocation23_spill] sm:$0xff] %v4174_v54  ;;  %v1423_v55 = vand.u32 4294901760, %v83_v53  ;;  %v1429_v54 = vand.u32 4294901760, %v100_v6  ;;  %v4193_v21 = vsub.f32 %v78_v1, %v2064_v35  ;;  %v4195_v56 = vsub.f32 %v86_v18, %v2068_v58 }
  0x8f   :  { %660 = vmatmul.mubr.f32.vlgmr.msra.gmra.mrb[0].mxu0 %v3875_v2  ;;  %4984 = vst [vmem:[#allocation21_spill] sm:$0xff] %v4168_v16  ;;  %3324 = vmatprep.subr.bf16.mxu1 %v3755_v23  ;;  %v102_v23 = vld [vmem:[#allocation5 + $0x1f8] sm:$0xff]  ;;  %4989 = vst [vmem:[#allocation26_spill] sm:$0xff] %v4187_v33  ;;  %v4201_v15 = vsub.f32 %v75_v12, %v1419_v28  ;;  %v4206_v1 = vpack.c.bf16 %v2070_v49, %v2066_v44 }
  0x90   :  { %3230 = vmatpush1.bf16.msra.mxu0 %v3759_v25  ;;  %746 = vmatprep.mubr.f32.mxu0 %v4941_v43  ;;  %v4185_v25 = vpack.c.bf16 %v1421_v59, %v1417_v62  ;;  %v4199_v62 = vpack.c.bf16 %v1423_v55, %v1419_v28  ;;  %v2072_v59 = vand.u32 4294901760, %v94_v11  ;;  %v2076_v33 = vand.u32 4294901760, %v102_v23 }
  0x91   :  { %3232 = vmatprep.subr.bf16.mxu0 %v3776_v46  ;;  %1307 = vmatmul.mubr.f32.vlgmr.msra.gmra.mrb[0].mxu1 %v3875_v2  ;;  %v4191_v46 = vpack.c.bf16 %v2068_v58, %v2064_v35  ;;  %4992 = vst [vmem:[#allocation29_spill] sm:$0xff] %v4206_v1  ;;  %v4208_v18 = vsub.f32 %v77_v4, %v2066_v44  ;;  %v1427_v28 = vand.u32 4294901760, %v91_v8  ;;  %v4893_v44 = vand.u32 4294901760, %v4138_v14 }
  0x92   :  { %4988 = vst [vmem:[#allocation25_spill] sm:$0xff] %v4185_v25  ;;  %3326 = vmatpush1.bf16.msra.mxu1 %v3768_v39  ;;  %1393 = vmatprep.mubr.f32.mxu1 %v4941_v43  ;;  %4991 = vst [vmem:[#allocation28_spill] sm:$0xff] %v4199_v62  ;;  %v99_v39 = vld [vmem:[#allocation5 + $0x1e0] sm:$0xff]  ;;  %v93_v25 = vld [vmem:[#allocation5 + $0x1b0] sm:$0xff]  ;;  %v4210_v35 = vsub.f32 %v85_v30, %v2070_v49  ;;  %v4214_v58 = vsub.f32 %v92_v63, %v1425_v40  ;;  %v4894_v49 = vand.u32 4294901760, %v4142_v38 }
  0x93   :  { %4990 = vst [vmem:[#allocation27_spill] sm:$0xff] %v4191_v46  ;;  %3328 = vmatprep.subr.bf16.mxu1 %v3780_v48  ;;  %v4204_v46 = vsub.f32 %v83_v53, %v1423_v55  ;;  %v101_v48 = vld [vmem:[#allocation5 + $0x1f0] sm:$0xff]  ;;  %v4216_v12 = vsub.f32 %v100_v6, %v1429_v54  ;;  %v4219_v62 = vsub.f32 %v94_v11, %v2072_v59  ;;  %v2074_v53 = vand.u32 4294901760, %v93_v25 }
  0x94   :  { %3234 = vmatpush1.bf16.msra.mxu0 %v3791_v61  ;;  %v4212_v61 = vpack.c.bf16 %v1429_v54, %v1425_v40  ;;  %v4895_v55 = vand.u32 4294901760, %v4130_v3  ;;  %v4224_v30 = vpack.c.bf16 %v2076_v33, %v2072_v59  ;;  %v4226_v4 = vsub.f32 %v102_v23, %v2076_v33 }
  0x95   :  { %3236 = vmatprep.subr.bf16.mxu0 %v3801_v7  ;;  %v1431_v7 = vand.u32 4294901760, %v99_v39  ;;  %v4228_v63 = vsub.f32 %v91_v8, %v1427_v28  ;;  %v2078_v6 = vand.u32 4294901760, %v101_v48  ;;  %v4892_v54 = vand.u32 4294901760, %v4136_v27 }
  0x96   :  { %4993 = vst [vmem:[#allocation30_spill] sm:$0xff] %v4212_v61  ;;  %3330 = vmatpush1.bf16.msra.mxu1 %v3797_v5  ;;  %4994 = vst [vmem:[#allocation31_spill] sm:$0xff] %v4224_v30  ;;  %v4891_v5 = vand.u32 4294901760, %v4132_v22  ;;  %v4899_v23 = vand.u32 4294901760, %v4155_v47  ;;  %v1496_v40 = vsub.f32 %v4130_v3, %v4895_v55  ;;  %v4898_v8 = vand.u32 4294901760, %v4157_v45 }
  0x97   :  { %3332 = vmatprep.subr.bf16.mxu1 %v3808_v13  ;;  %v4896_v13 = vand.u32 4294901760, %v4144_v10  ;;  %v4240_v33 = vpack.c.bf16 %v1431_v7, %v1427_v28  ;;  %v4250_v59 = vpack.c.bf16 %v2078_v6, %v2074_v53  ;;  %v4252_v11 = vsub.f32 %v93_v25, %v2074_v53 }
  0x98   :  { %3238 = vmatpush1.bf16.msra.mxu0 %v3817_v34  ;;  %v4897_v34 = vand.u32 4294901760, %v4148_v31  ;;  %v4907_v28 = vand.u32 4294901760, %v4163_v26  ;;  %v1502_v25 = vsub.f32 %v4142_v38, %v4894_v49  ;;  %v4283_v49 = vsub.f32 %v101_v48, %v2078_v6 }
  0x99   :  { %3240 = vmatprep.subr.bf16.mxu0 %v4942_v20  ;;  %4995 = vst [vmem:[#allocation32_spill] sm:$0xff] %v4240_v33  ;;  %v4242_v20 = vsub.f32 %v99_v39, %v1431_v7  ;;  %4996 = vst [vmem:[#allocation33_spill] sm:$0xff] %v4250_v59  ;;  %v1508_v39 = vsub.f32 %v4132_v22, %v4891_v5  ;;  %v1514_v7 = vsub.f32 %v4144_v10, %v4896_v13 }
  0x9a   :  { %3334 = vmatpush1.bf16.msra.mxu1 %v4945_v37  ;;  %v4902_v37 = vand.u32 4294901760, %v4161_v50  ;;  %v2149_v53 = vsub.f32 %v4148_v31, %v4897_v34  ;;  %v4997_v5 = vand.u32 4294901760, %v4150_v36  ;;  %v1497_v55 = vand.u32 4294901760, %v1496_v40 }
  0x9b   :  { %3336 = vmatprep.subr.bf16.mxu1 %v4946_v32  ;;  %v2143_v32 = vsub.f32 %v4136_v27, %v4892_v54  ;;  %v1532_v13 = vsub.f32 %v4157_v45, %v4898_v8  ;;  %v1509_v40 = vand.u32 4294901760, %v1508_v39  ;;  %v1503_v34 = vand.u32 4294901760, %v1502_v25 }
  0x9c   :  { %3242 = vmatpush1.bf16.msra.mxu0 %v4947_v60  ;;  %v2155_v60 = vsub.f32 %v4138_v14, %v4893_v44  ;;  %v2161_v54 = vsub.f32 %v4150_v36, %v4997_v5  ;;  %v1520_v44 = vsub.f32 %v4155_v47, %v4899_v23  ;;  %v2167_v5 = vsub.f32 %v4161_v50, %v4902_v37 }
  0x9d   :  { %3340 = vmatprep.subr.bf16.mxu0 %v4128_v24  ;;  %v2144_v8 = vand.u32 4294901760, %v2143_v32  ;;  %v2150_v37 = vand.u32 4294901760, %v2149_v53  ;;  %v4998_v6 = vand.u32 4294901760, %v4165_v57  ;;  %v3355_v39 = vpack.c.bf16 %v1509_v40, %v1497_v55  ;;  %v5003_v32 = vld [vmem:[#allocation26_spill] sm:$0xff]  ;;  %v5007_v40 = vld [vmem:[#allocation27_spill] sm:$0xff] }
  0x9e   :  { %3338 = vmatpush1.bf16.msra.mxu1 %v4954_v52  ;;  %v2179_v52 = vsub.f32 %v4163_v26, %v4907_v28  ;;  %v2156_v23 = vand.u32 4294901760, %v2155_v60  ;;  %v1521_v24 = vand.u32 4294901760, %v1520_v44  ;;  %v1533_v28 = vand.u32 4294901760, %v1532_v13  ;;  %v4999_v60 = vld [vmem:[#allocation19_spill] sm:$0xff] }
  0x9f   :  { %748 = vmatmul.mubr.f32.vlgmr.msra.gmra.mrb[0].mxu0 %v3875_v2  ;;  %3436 = vmatprep.subr.bf16.mxu1 %v4134_v0  ;;  %v2162_v0 = vand.u32 4294901760, %v2161_v54  ;;  %v1526_v48 = vsub.f32 %v4165_v57, %v4998_v6  ;;  %v2168_v25 = vand.u32 4294901760, %v2167_v5  ;;  %v5000_v44 = vand.u32 4294901760, %v4170_v41  ;;  %v5002_v6 = vld [vmem:[#allocation25_spill] sm:$0xff] }
  0xa0   :  { %3342 = vmatpush1.bf16.msra.mxu0 %v4140_v19  ;;  %1481 = vmatprep.mubr.f32.mxu0 %v4941_v43  ;;  %v1515_v19 = vand.u32 4294901760, %v1514_v7  ;;  %v2180_v54 = vand.u32 4294901760, %v2179_v52  ;;  %v5001_v13 = vand.u32 4294901760, %v4176_v9 }
  0xa1   :  { %3344 = vmatprep.subr.bf16.mxu0 %v4152_v51  ;;  %1395 = vmatmul.mubr.f32.vlgmr.msra.gmra.mrb[0].mxu1 %v3875_v2  ;;  %v1538_v7 = vsub.f32 %v4170_v41, %v5000_v44  ;;  %v4921_v51 = vand.u32 4294901760, %v5003_v32  ;;  %v5004_v41 = vld [vmem:[#allocation23_spill] sm:$0xff]  ;;  %v3453_v57 = vpack.c.bf16 %v2162_v0, %v2150_v37  ;;  %v1527_v52 = vand.u32 4294901760, %v1526_v48 }
  0xa2   :  { %3438 = vmatpush1.bf16.msra.mxu1 %v4146_v17  ;;  %2128 = vmatprep.mubr.f32.mxu1 %v4941_v43  ;;  %v4317_v53 = vsub.f32 %v4176_v9, %v5001_v13  ;;  %v3451_v17 = vpack.c.bf16 %v2156_v23, %v2144_v8  ;;  %v3359_v13 = vpack.c.bf16 %v1533_v28, %v1521_v24  ;;  %v5005_v9 = vand.u32 4294901760, %v4180_v42 }
  0xa3   :  { %3440 = vmatprep.subr.bf16.mxu1 %v4999_v60  ;;  %v4920_v60 = vand.u32 4294901760, %v4193_v21  ;;  %v5006_v23 = vand.u32 4294901760, %v4182_v29  ;;  %v1539_v5 = vand.u32 4294901760, %v1538_v7  ;;  %v1556_v24 = vsub.f32 %v5003_v32, %v4921_v51 }
  0xa4   :  { %3346 = vmatpush1.bf16.msra.mxu0 %v4168_v16  ;;  %v3357_v16 = vpack.c.bf16 %v1515_v19, %v1503_v34  ;;  %v2185_v55 = vsub.f32 %v4180_v42, %v5005_v9  ;;  %v5008_v19 = vld [vmem:[#allocation28_spill] sm:$0xff]  ;;  %v3455_v34 = vpack.c.bf16 %v2180_v54, %v2168_v25  ;;  %v2174_v44 = vand.u32 4294901760, %v4317_v53 }
  0xa5   :  { %3348 = vmatprep.subr.bf16.mxu0 %v5002_v6  ;;  %v1544_v8 = vsub.f32 %v4182_v29, %v5006_v23  ;;  %v2191_v0 = vsub.f32 %v4193_v21, %v4920_v60  ;;  %v5009_v28 = vand.u32 4294901760, %v4195_v56  ;;  %v5010_v25 = vand.u32 4294901760, %v4201_v15 }
  0xa6   :  { %3442 = vmatpush1.bf16.msra.mxu1 %v5004_v41  ;;  %v5011_v7 = vand.u32 4294901760, %v4204_v46  ;;  %v2186_v60 = vand.u32 4294901760, %v2185_v55  ;;  %v1557_v23 = vand.u32 4294901760, %v1556_v24  ;;  %v5012_v55 = vand.u32 4294901760, %v4214_v58 }
  0xa7   :  { %3444 = vmatprep.subr.bf16.mxu1 %v5007_v40  ;;  %v2203_v48 = vsub.f32 %v4195_v56, %v5009_v28  ;;  %v1550_v54 = vsub.f32 %v4201_v15, %v5010_v25  ;;  %v1545_v51 = vand.u32 4294901760, %v1544_v8  ;;  %v3361_v28 = vpack.c.bf16 %v1539_v5, %v1527_v52 }
  0xa8   :  { %3350 = vmatpush1.bf16.msra.mxu0 %v5008_v19  ;;  %v1562_v53 = vsub.f32 %v4204_v46, %v5011_v7  ;;  %v4932_v25 = vand.u32 4294901760, %v4226_v4  ;;  %v1568_v8 = vsub.f32 %v4214_v58, %v5012_v55  ;;  %v5013_v9 = vand.u32 4294901760, %v4216_v12 }
  0xa9   :  { %3352 = vmatprep.subr.bf16.mxu0 %v4212_v61  ;;  %v5014_v52 = vand.u32 4294901760, %v4208_v18  ;;  %v5016_v24 = vand.u32 4294901760, %v4210_v35  ;;  %v5017_v55 = vand.u32 4294901760, %v4219_v62 }
  0xaa   :  { %3446 = vmatpush1.bf16.msra.mxu1 %v4206_v1  ;;  %v2192_v1 = vand.u32 4294901760, %v2191_v0  ;;  %v1580_v37 = vsub.f32 %v4216_v12, %v5013_v9  ;;  %v1563_v5 = vand.u32 4294901760, %v1562_v53  ;;  %v5018_v53 = vand.u32 4294901760, %v4228_v63 }
  0xab   :  { %3448 = vmatprep.subr.bf16.mxu1 %v4224_v30  ;;  %v2204_v30 = vand.u32 4294901760, %v2203_v48  ;;  %v2197_v61 = vsub.f32 %v4208_v18, %v5014_v52  ;;  %v2209_v0 = vsub.f32 %v4210_v35, %v5016_v24  ;;  %v2215_v7 = vsub.f32 %v4219_v62, %v5017_v55 }
  0xac   :  { %3354 = vmatpush1.bf16.msra.mxu0 %v4240_v33  ;;  %v1551_v33 = vand.u32 4294901760, %v1550_v54  ;;  %v2227_v54 = vsub.f32 %v4226_v4, %v4932_v25  ;;  %v1574_v52 = vsub.f32 %v4228_v63, %v5018_v53  ;;  %v5019_v24 = vand.u32 4294901760, %v4242_v20 }
  0xad   :  { %3356 = vmatprep.subr.bf16.mxu0 %v3355_v39  ;;  %v5015_v39 = vld [vmem:[#allocation18_spill] sm:$0xff]  ;;  %v3363_v55 = vpack.c.bf16 %v1557_v23, %v1545_v51  ;;  %v1569_v19 = vand.u32 4294901760, %v1568_v8  ;;  %v1581_v9 = vand.u32 4294901760, %v1580_v37  ;;  %v2198_v48 = vand.u32 4294901760, %v2197_v61 }
  0xae   :  { %3450 = vmatpush1.bf16.msra.mxu1 %v4250_v59  ;;  %v1586_v59 = vsub.f32 %v4242_v20, %v5019_v24  ;;  %v3365_v25 = vpack.c.bf16 %v1563_v5, %v1551_v33  ;;  %v2210_v40 = vand.u32 4294901760, %v2209_v0  ;;  %v5020_v53 = vand.u32 4294901760, %v4252_v11  ;;  %v5024_v0 = vld [vmem:[#allocation24_spill] sm:$0xff] }
  0xaf   :  { %1487 = vmatmul.mubr.f32.vlgmr.msra.gmra.mrb[2].mxu0 %v5015_v39  ;;  %3452 = vmatprep.subr.bf16.mxu1 %v3451_v17  ;;  %v3457_v17 = vpack.c.bf16 %v2186_v60, %v2174_v44  ;;  %v5021_v24 = vand.u32 4294901760, %v4283_v49  ;;  %v2228_v37 = vand.u32 4294901760, %v2227_v54  ;;  %v1575_v60 = vand.u32 4294901760, %v1574_v52 }
  0xb0   :  { %3358 = vmatpush1.bf16.msra.mxu0 %v3357_v16  ;;  %1637 = vmatprep.mubr.f32.mxu0 %v4941_v43  ;;  %v3459_v16 = vpack.c.bf16 %v2204_v30, %v2192_v1  ;;  %v2221_v41 = vsub.f32 %v4252_v11, %v5020_v53  ;;  %v1587_v1 = vand.u32 4294901760, %v1586_v59  ;;  %v3461_v61 = vpack.c.bf16 %v2210_v40, %v2198_v48 }
  0xb1   :  { %3360 = vmatprep.subr.bf16.mxu0 %v3359_v13  ;;  %2134 = vmatmul.mubr.f32.vlgmr.msra.gmra.mrb[2].mxu1 %v5015_v39  ;;  %v2233_v51 = vsub.f32 %v4283_v49, %v5021_v24  ;;  %v2216_v13 = vand.u32 4294901760, %v2215_v7  ;;  %v3371_v8 = vpack.c.bf16 %v4132_v22, %v4130_v3  ;;  %v3467_v59 = vpack.c.bf16 %v4138_v14, %v4136_v27  ;;  %v5023_v7 = vld [vmem:[#allocation22_spill] sm:$0xff]  ;;  %v5025_v24 = vld [vmem:[#allocation12_spill] sm:$0xff] }
  0xb2   :  { %3454 = vmatpush1.bf16.msra.mxu1 %v3453_v57  ;;  %2284 = vmatprep.mubr.f32.mxu1 %v4941_v43  ;;  %v3367_v57 = vpack.c.bf16 %v1581_v9, %v1569_v19  ;;  %v2222_v30 = vand.u32 4294901760, %v2221_v41  ;;  %v3369_v23 = vpack.c.bf16 %v1587_v1, %v1575_v60  ;;  %v3373_v40 = vpack.c.bf16 %v4144_v10, %v4142_v38  ;;  %v5029_v60 = vld [vmem:[#allocation15_spill] sm:$0xff]  ;;  %v5030_v1 = vld [vmem:[#allocation14_spill] sm:$0xff] }
  0xb3   :  { %3456 = vmatprep.subr.bf16.mxu1 %v3455_v34  ;;  %v2234_v33 = vand.u32 4294901760, %v2233_v51  ;;  %v3463_v44 = vpack.c.bf16 %v2228_v37, %v2216_v13  ;;  %v3375_v41 = vpack.c.bf16 %v4157_v45, %v4155_v47  ;;  %v3469_v19 = vpack.c.bf16 %v4150_v36, %v4148_v31  ;;  %v5026_v51 = vld [vmem:[#allocation16_spill] sm:$0xff]  ;;  %v5027_v13 = vld [vmem:[#allocation11_spill] sm:$0xff]  ;;  %v5028_v37 = vld [vmem:[#allocation13_spill] sm:$0xff] }
  0xb4   :  { %3362 = vmatpush1.bf16.msra.mxu0 %v3361_v28  ;;  %v3471_v28 = vpack.c.bf16 %v4163_v26, %v4161_v50  ;;  %v3379_v39 = vpack.c.bf16 %v5003_v32, %v4182_v29  ;;  %v3473_v9 = vpack.c.bf16 %v4180_v42, %v5024_v0  ;;  %v3475_v48 = vpack.c.bf16 %v4195_v56, %v4193_v21 }
  0xb5   :  { %3364 = vmatprep.subr.bf16.mxu0 %v3363_v55  ;;  %v3465_v34 = vpack.c.bf16 %v2234_v33, %v2222_v30  ;;  %v3381_v54 = vpack.c.bf16 %v4204_v46, %v4201_v15  ;;  %v3383_v52 = vpack.c.bf16 %v4216_v12, %v4214_v58  ;;  %v3477_v55 = vpack.c.bf16 %v4210_v35, %v4208_v18  ;;  %v5033_v30 = vld [vmem:[#allocation23_spill] sm:$0xff] }
  0xb6   :  { %3458 = vmatpush1.bf16.msra.mxu1 %v3457_v17  ;;  %v3479_v17 = vpack.c.bf16 %v4226_v4, %v4219_v62  ;;  %v3481_v53 = vpack.c.bf16 %v4283_v49, %v4252_v11  ;;  %v5034_v33 = vld [vmem:[#allocation27_spill] sm:$0xff] }
  0xb7   :  { %3460 = vmatprep.subr.bf16.mxu1 %v3459_v16  ;;  %v3385_v16 = vpack.c.bf16 %v4242_v20, %v4228_v63 }
  0xb8   :  { %3366 = vmatpush1.bf16.msra.mxu0 %v3365_v25  ;;  %v5022_v25 = vld [vmem:[#allocation20_spill] sm:$0xff] }
  0xb9   :  { %3368 = vmatprep.subr.bf16.mxu0 %v3367_v57  ;;  %v3377_v5 = vpack.c.bf16 %v5023_v7, %v5022_v25  ;;  %v5031_v57 = vld [vmem:[#allocation19_spill] sm:$0xff] }
  0xba   :  { %3462 = vmatpush1.bf16.msra.mxu1 %v3461_v61  ;;  %v5032_v61 = vld [vmem:[#allocation21_spill] sm:$0xff] }
  0xbb   :  { %3464 = vmatprep.subr.bf16.mxu1 %v3463_v44  ;;  %v5035_v44 = vld [vmem:[#allocation28_spill] sm:$0xff] }
  0xbc   :  { %3370 = vmatpush1.bf16.msra.mxu0 %v3369_v23  ;;  %v5036_v23 = vld [vmem:[#allocation30_spill] sm:$0xff] }
  0xbd   :  { %3372 = vmatprep.subr.bf16.mxu0 %v3371_v8  ;;  %v5037_v8 = vand.u32 4294901760, %v4130_v3  ;;  %v5046_v3 = vand.u32 4294901760, %v4155_v47  ;;  %v5054_v47 = vand.u32 4294901760, %v5022_v25  ;;  %v5060_v25 = vand.u32 4294901760, %v4193_v21 }
  0xbe   :  { %3466 = vmatpush1.bf16.msra.mxu1 %v3465_v34  ;;  %v5038_v34 = vand.u32 4294901760, %v4132_v22  ;;  %v5047_v22 = vand.u32 4294901760, %v4157_v45  ;;  %v5055_v45 = vand.u32 4294901760, %v5023_v7  ;;  %v5062_v7 = vand.u32 4294901760, %v4201_v15 }
  0xbf   :  { %1639 = vmatmul.mubr.f32.vlgmr.msra.gmra.mrb[2].mxu0 %v3875_v2  ;;  %3468 = vmatprep.subr.bf16.mxu1 %v3467_v59  ;;  %v5069_v15 = vand.u32 4294901760, %v4226_v4 }
  0xc0   :  { %3374 = vmatpush1.bf16.msra.mxu0 %v3373_v40  ;;  %1741 = vmatprep.mubr.f32.mxu0 %v4941_v43  ;;  %v3403_v59 = vpack.c.bf16 %v5038_v34, %v5037_v8  ;;  %v5039_v40 = vld [vmem:[#allocation29_spill] sm:$0xff]  ;;  %v5056_v8 = vand.u32 4294901760, %v4182_v29  ;;  %v5061_v29 = vand.u32 4294901760, %v4195_v56  ;;  %v5068_v56 = vand.u32 4294901760, %v4219_v62 }
  0xc1   :  { %3376 = vmatprep.subr.bf16.mxu0 %v3375_v41  ;;  %2286 = vmatmul.mubr.f32.vlgmr.msra.gmra.mrb[2].mxu1 %v3875_v2  ;;  %v5040_v41 = vld [vmem:[#allocation31_spill] sm:$0xff] }
  0xc2   :  { %3470 = vmatpush1.bf16.msra.mxu1 %v3469_v19  ;;  %2388 = vmatprep.mubr.f32.mxu1 %v4941_v43  ;;  %v5041_v19 = vld [vmem:[#allocation32_spill] sm:$0xff] }
  0xc3   :  { %3472 = vmatprep.subr.bf16.mxu1 %v3471_v28  ;;  %v5042_v28 = vand.u32 4294901760, %v4136_v27  ;;  %v5050_v27 = vand.u32 4294901760, %v4148_v31  ;;  %v5057_v31 = vand.u32 4294901760, %v5003_v32  ;;  %v3507_v32 = vpack.c.bf16 %v5061_v29, %v5060_v25 }
  0xc4   :  { %3378 = vmatpush1.bf16.msra.mxu0 %v3377_v5  ;;  %v5043_v5 = vand.u32 4294901760, %v4138_v14  ;;  %v5051_v14 = vand.u32 4294901760, %v4150_v36  ;;  %v5058_v36 = vand.u32 4294901760, %v5024_v0  ;;  %v5064_v0 = vand.u32 4294901760, %v4214_v58 }
  0xc5   :  { %3380 = vmatprep.subr.bf16.mxu0 %v3379_v39  ;;  %v3411_v34 = vpack.c.bf16 %v5057_v31, %v5056_v8  ;;  %v5071_v58 = vand.u32 4294901760, %v4242_v20  ;;  %v3694_v8 = vmov 2131351028  }
  0xc6   :  { %3474 = vmatpush1.bf16.msra.mxu1 %v3473_v9  ;;  %v3499_v39 = vpack.c.bf16 %v5043_v5, %v5042_v28  ;;  %v5044_v9 = vand.u32 4294901760, %v4142_v38  ;;  %v5052_v38 = vand.u32 4294901760, %v4161_v50  ;;  %v5059_v50 = vand.u32 4294901760, %v4180_v42 }
  0xc7   :  { %3476 = vmatprep.subr.bf16.mxu1 %v3475_v48  ;;  %v5045_v48 = vand.u32 4294901760, %v4144_v10  ;;  %v5053_v10 = vand.u32 4294901760, %v4163_v26  ;;  %v5065_v42 = vand.u32 4294901760, %v4216_v12  ;;  %v5072_v12 = vand.u32 4294901760, %v4252_v11 }
  0xc8   :  { %3382 = vmatpush1.bf16.msra.mxu0 %v3381_v54  ;;  %v3505_v26 = vpack.c.bf16 %v5059_v50, %v5058_v36  ;;  %v3696_v50 = vmov 920167782  }
  0xc9   :  { %3384 = vmatprep.subr.bf16.mxu0 %v3383_v52  ;;  %v3405_v54 = vpack.c.bf16 %v5045_v48, %v5044_v9  ;;  %v3407_v52 = vpack.c.bf16 %v5047_v22, %v5046_v3  ;;  %v3415_v5 = vpack.c.bf16 %v5065_v42, %v5064_v0  ;;  %v5067_v9 = vand.u32 4294901760, %v4210_v35 }
  0xca   :  { %3478 = vmatpush1.bf16.msra.mxu1 %v3477_v55  ;;  %v5048_v55 = vld [vmem:[#allocation33_spill] sm:$0xff]  ;;  %v5070_v48 = vand.u32 4294901760, %v4228_v63 }
  0xcb   :  { %3480 = vmatprep.subr.bf16.mxu1 %v3479_v17  ;;  %v5049_v17 = vld [vmem:[#allocation17_spill] sm:$0xff] }
  0xcc   :  { %3386 = vmatpush1.bf16.msra.mxu0 %v3385_v16  ;;  %v3501_v16 = vpack.c.bf16 %v5051_v14, %v5050_v27 }
  0xcd   :  { %3388 = vmatprep.subr.bf16.mxu0 %v5025_v24 }
  0xce   :  { %3482 = vmatpush1.bf16.msra.mxu1 %v3481_v53  ;;  %v3503_v53 = vpack.c.bf16 %v5053_v10, %v5052_v38 }
  0xcf   :  { %1744 = vmatmul.mubr.f32.vlgmr.msra.gmra.mrb[2].mxu0 %v5026_v51  ;;  %3484 = vmatprep.subr.bf16.mxu1 %v5027_v13 }
  0xd0   :  { %3390 = vmatpush1.bf16.msra.mxu0 %v5028_v37  ;;  %1830 = vmatprep.mubr.f32.mxu0 %v4941_v43 }
  0xd1   :  { %3392 = vmatprep.subr.bf16.mxu0 %v5029_v60  ;;  %2391 = vmatmul.mubr.f32.vlgmr.msra.gmra.mrb[2].mxu1 %v5026_v51  ;;  %v3409_v51 = vpack.c.bf16 %v5055_v45, %v5054_v47  ;;  %v3693_v45 = vmov 2475754826  }
  0xd2   :  { %3486 = vmatpush1.bf16.msra.mxu1 %v5030_v1  ;;  %2477 = vmatprep.mubr.f32.mxu1 %v4941_v43 }
  0xd3   :  { %3488 = vmatprep.subr.bf16.mxu1 %v5031_v57 }
  0xd4   :  { %3394 = vmatpush1.bf16.msra.mxu0 %v5032_v61 }
  0xd5   :  { %3396 = vmatprep.subr.bf16.mxu0 %v5002_v6 }
  0xd6   :  { %3490 = vmatpush1.bf16.msra.mxu1 %v5033_v30 }
  0xd7   :  { %3492 = vmatprep.subr.bf16.mxu1 %v5034_v33 }
  0xd8   :  { %3398 = vmatpush1.bf16.msra.mxu0 %v5035_v44 }
  0xd9   :  { %3400 = vmatprep.subr.bf16.mxu0 %v5036_v23 }
  0xda   :  { %3494 = vmatpush1.bf16.msra.mxu1 %v5039_v40 }
  0xdb   :  { %3496 = vmatprep.subr.bf16.mxu1 %v5040_v41 }
  0xdc   :  { %3402 = vmatpush1.bf16.msra.mxu0 %v5041_v19 }
  0xdd   :  { %3404 = vmatprep.subr.bf16.mxu0 %v3403_v59  ;;  %v5063_v59 = vand.u32 4294901760, %v4204_v46  ;;  %v3511_v46 = vpack.c.bf16 %v5069_v15, %v5068_v56 }
  0xde   :  { %3498 = vmatpush1.bf16.msra.mxu1 %v5048_v55 }
  0xdf   :  { %1834 = vmatmul.mubr.f32.vlgmr.msra.gmra.mrb[2].mxu0 %v5049_v17  ;;  %3500 = vmatprep.subr.bf16.mxu1 %v3499_v39  ;;  %v3413_v28 = vpack.c.bf16 %v5063_v59, %v5062_v7  ;;  %v5066_v39 = vand.u32 4294901760, %v4208_v18  ;;  %v5073_v18 = vand.u32 4294901760, %v4283_v49 }
  0xe0   :  { %3406 = vmatpush1.bf16.msra.mxu0 %v3405_v54  ;;  %1952 = vmatprep.mubr.f32.mxu0 %v4941_v43  ;;  %v3417_v54 = vpack.c.bf16 %v5071_v58, %v5070_v48 }
  0xe1   :  { %3408 = vmatprep.subr.bf16.mxu0 %v3407_v52  ;;  %2481 = vmatmul.mubr.f32.vlgmr.msra.gmra.mrb[2].mxu1 %v5049_v17  ;;  %v3509_v21 = vpack.c.bf16 %v5067_v9, %v5066_v39  ;;  %v3513_v35 = vpack.c.bf16 %v5073_v18, %v5072_v12 }
  0xe2   :  { %3502 = vmatpush1.bf16.msra.mxu1 %v3501_v16  ;;  %2599 = vmatprep.mubr.f32.mxu1 %v4941_v43 }
  0xe3   :  { %3504 = vmatprep.subr.bf16.mxu1 %v3503_v53  ;;  %v3692_v53 = vmov 683565275  }
  0xe4   :  { %3410 = vmatpush1.bf16.msra.mxu0 %v3409_v51 }
  0xe5   :  { %3412 = vmatprep.subr.bf16.mxu0 %v3411_v34  ;;  %v3695_v34 = vmov 2102212464  }
  0xe6   :  { %3506 = vmatpush1.bf16.msra.mxu1 %v3505_v26 }
  0xe7   :  { %3508 = vmatprep.subr.bf16.mxu1 %v3507_v32 }
  0xe8   :  { %3414 = vmatpush1.bf16.msra.mxu0 %v3413_v28  ;;  %v3697_v28 = vmov 1326507024  }
  0xe9   :  { %3416 = vmatprep.subr.bf16.mxu0 %v3415_v5 }
  0xea   :  { %3510 = vmatpush1.bf16.msra.mxu1 %v3509_v21 }
  0xeb   :  { %3512 = vmatprep.subr.bf16.mxu1 %v3511_v46 }
  0xec   :  { %3418 = vmatpush1.bf16.msra.mxu0 %v3417_v54 }
  0xed   :  { %3420 = vmatprep.subr.bf16.mxu0 %v5025_v24 }
  0xee   :  { %3514 = vmatpush1.bf16.msra.mxu1 %v3513_v35 }
  0xef   :  { %1954 = vmatmul.mubr.f32.vlgmr.msra.gmra.mrb[2].mxu0 %v3875_v2  ;;  %3516 = vmatprep.subr.bf16.mxu1 %v5027_v13 }
  0xf0   :  { %3422 = vmatpush1.bf16.msra.mxu0 %v5028_v37  ;;  %2040 = vmatprep.mubr.f32.mxu0 %v4941_v43 }
  0xf1   :  { %3424 = vmatprep.subr.bf16.mxu0 %v5029_v60  ;;  %2601 = vmatmul.mubr.f32.vlgmr.msra.gmra.mrb[2].mxu1 %v3875_v2 }
  0xf2   :  { %3518 = vmatpush1.bf16.msra.mxu1 %v5030_v1  ;;  %2687 = vmatprep.mubr.f32.mxu1 %v4941_v43 }
  0xf3   :  { %3520 = vmatprep.subr.bf16.mxu1 %v5031_v57 }
  0xf4   :  { %3426 = vmatpush1.bf16.msra.mxu0 %v5032_v61 }
  0xf5   :  { %3428 = vmatprep.subr.bf16.mxu0 %v5002_v6 }
  0xf6   :  { %3522 = vmatpush1.bf16.msra.mxu1 %v5033_v30 }
  0xf7   :  { %3524 = vmatprep.subr.bf16.mxu1 %v5034_v33 }
  0xf8   :  { %3430 = vmatpush1.bf16.msra.mxu0 %v5035_v44 }
  0xf9   :  { %3432 = vmatprep.subr.bf16.mxu0 %v5036_v23 }
  0xfa   :  { %3526 = vmatpush1.bf16.msra.mxu1 %v5039_v40 }
  0xfb   :  { %3528 = vmatprep.subr.bf16.mxu1 %v5040_v41 }
  0xfc   :  { %3434 = vmatpush1.bf16.msra.mxu0 %v5041_v19 }
  0xfe   :  { %3530 = vmatpush1.bf16.msra.mxu1 %v5048_v55 }
  0xff   :  { %2042 = vmatmul.mubr.f32.vlgmr.msra.gmra.mrb[2].mxu0 %v3875_v2 }
 0x101   :  { %2689 = vmatmul.mubr.f32.vlgmr.msra.gmra.mrb[2].mxu1 %v3875_v2 }
 0x172   :  { %v4545_v43 = vpop.f32.mrb[0].mxu0 }
 0x173   :  { %v2695_v62 = vand.u32 2147483647, %v4545_v43  ;;  %v2698_v4 = vand.u32 2139095040, %v4545_v43  ;;  %v4549_v63 = vpop.f32.mrb[1].mxu0 }
 0x174   :  { %v2801_v49 = vand.u32 2139095040, %v4549_v63  ;;  %v4554_v6 = vpop.f32.mrb[0].mxu1  ;;  %v2798_v24 = vand.u32 2147483647, %v4549_v63 }
 0x175   :  { %v2699_v11 = vshrl.u32 %v2698_v4, 23  ;;  %v2702_v20 = vand.u32 8388607, %v2695_v62  ;;  %v2901_v2 = vand.u32 2147483647, %v4554_v6  ;;  %v2904_v13 = vand.u32 2139095040, %v4554_v6 }
 0x176   :  { %v2802_v60 = vshrl.u32 %v2801_v49, 23  ;;  %v4559_v1 = vpop.f32.mrb[1].mxu1  ;;  %v4565_v23 = vand.u32 8388607, %v2798_v24 }
 0x177   :  { %v3131_v37 = vadd.s32 4294967169, %v2699_v11  ;;  %v2905_v57 = vshrl.u32 %v2904_v13, 23  ;;  %v2908_v61 = vand.u32 8388607, %v2901_v2  ;;  %v2703_v30 = vor.u32 8388608, %v2702_v20 }
 0x178   :  { %v3135_v44 = vadd.s32 4294967169, %v2802_v60  ;;  %v2806_v27 = vor.u32 8388608, %v4565_v23  ;;  %v3004_v16 = vand.u32 2147483647, %v4559_v1  ;;  %v3007_v38 = vand.u32 2139095040, %v4559_v1 }
 0x179   :  { %v2705_v33 = vadd.s32 1, %v3131_v37  ;;  %v3139_v40 = vadd.s32 4294967169, %v2905_v57  ;;  %v2909_v41 = vor.u32 8388608, %v2908_v61  ;;  %v4567_v17 = vshll.u32 %v2703_v30, 8 }
 0x17a   :  { %v2808_v19 = vadd.s32 1, %v3135_v44 }
 0x17b   :  { %vm2706_vm1 = vcmp.gt.s32.totalorder %v2705_v33, 0  ;;  %v2911_v22 = vadd.s32 1, %v3139_v40  ;;  %v4570_v14 = vshll.u32 %v2909_v41, 8 }
 0x17c   :  { %v2707_v3 = vsel %vm2706_vm1, %v2705_v33, 0  ;;  %vm2809_vm2 = vcmp.gt.s32.totalorder %v2808_v19, 0 }
 0x17d   :  { %v2708_v52 = vshrl.u32 %v2707_v3, 5  ;;  %v2709_v55 = vand.u32 31, %v2707_v3  ;;  %vm2912_vm3 = vcmp.gt.s32.totalorder %v2911_v22, 0  ;;  %v2810_v13 = vsel %vm2809_vm2, %v2808_v19, 0 }
 0x17e   :  { %v2913_v9 = vsel %vm2912_vm3, %v2911_v22, 0 }
 0x17f   :  { %v2710_v10 = vsub.s32 32, %v2709_v55  ;;  %v2712_v47 = vshll.u32 %v3692_v53, %v2709_v55  ;;  %v2715_v51 = vshll.u32 %v3693_v45, %v2709_v55  ;;  %v2718_v31 = vshll.u32 %v3694_v8, %v2709_v55 }
 0x180   :  { %v2721_v36 = vshll.u32 %v3695_v34, %v2709_v55  ;;  %v2724_v26 = vshll.u32 %v3696_v50, %v2709_v55  ;;  %vm2727_vm4 = vcmp.lt.s32.totalorder %v2708_v52, 1  ;;  %vm2728_vm5 = vcmp.lt.s32.totalorder %v2708_v52, 2 }
 0x181   :  { %v2713_v25 = vshrl.u32 %v3693_v45, %v2710_v10  ;;  %v2716_v29 = vshrl.u32 %v3694_v8, %v2710_v10  ;;  %v2719_v32 = vshrl.u32 %v3695_v34, %v2710_v10  ;;  %v2711_v7 = vshrl.u32 %v3692_v53, %v2710_v10 }
 0x182   :  { %v2722_v59 = vshrl.u32 %v3696_v50, %v2710_v10  ;;  %v2725_v0 = vshrl.u32 %v3697_v28, %v2710_v10  ;;  %vm2729_vm6 = vcmp.lt.s32.totalorder %v2708_v52, 3  ;;  %vm2730_vm7 = vcmp.lt.s32.totalorder %v2708_v52, 4 }
 0x183   :  { %v2714_v42 = vor.u32 %v2713_v25, %v2712_v47  ;;  %v2717_v5 = vor.u32 %v2716_v29, %v2715_v51  ;;  %v2720_v39 = vor.u32 %v2719_v32, %v2718_v31  ;;  %v2915_v15 = vand.u32 31, %v2913_v9 }
 0x184   :  { %v2723_v21 = vor.u32 %v2722_v59, %v2721_v36  ;;  %v2726_v56 = vor.u32 %v2725_v0, %v2724_v26  ;;  %v2914_v57 = vshrl.u32 %v2913_v9, 5 }
 0x185   :  { %v2731_v46 = vsel %vm2727_vm4, %v2711_v7, %v2714_v42  ;;  %v2732_v48 = vsel %vm2730_vm7, %v2720_v39, 2102212464  ;;  %v2735_v58 = vsel %vm2727_vm4, %v2714_v42, %v2717_v5  ;;  %v2739_v54 = vsel %vm2727_vm4, %v2717_v5, %v2720_v39 }
 0x186   :  { %v2733_v12 = vsel %vm2729_vm6, %v2717_v5, %v2732_v48  ;;  %v2736_v18 = vsel %vm2730_vm7, %v2723_v21, 920167782  ;;  %v2740_v35 = vsel %vm2730_vm7, %v2726_v56, 1326507024  ;;  %v2916_v4 = vsub.s32 32, %v2915_v15 }
 0x187   :  { %v2734_v49 = vsel %vm2728_vm5, %v2731_v46, %v2733_v12  ;;  %v2737_v11 = vsel %vm2729_vm6, %v2720_v39, %v2736_v18  ;;  %v2741_v20 = vsel %vm2729_vm6, %v2723_v21, %v2740_v35  ;;  %v2918_v61 = vshll.u32 %v3692_v53, %v2915_v15 }
 0x188   :  { %v2738_v37 = vsel %vm2728_vm5, %v2735_v58, %v2737_v11  ;;  %v2742_v60 = vsel %vm2728_vm5, %v2739_v54, %v2741_v20  ;;  %v2750_v41 = vmul.u32 %v4567_v17, %v2734_v49  ;;  %v2919_v19 = vshrl.u32 %v3693_v45, %v2916_v4 }
 0x189   :  { %v4598_v30 = vmul.u32.u64.low %v4567_v17, %v2742_v60  ;;  %v4599_v33 = vmul.u32.u64.high %v4567_v17, %v2742_v60, %v4598_v30  ;;  %v4602_v44 = vmul.u32.u64.low %v4567_v17, %v2738_v37  ;;  %v4603_v40 = vmul.u32.u64.high %v4567_v17, %v2738_v37, %v4602_v44 }
 0x18a   :  { %v2921_v3 = vshll.u32 %v3693_v45, %v2915_v15  ;;  %v2922_v22 = vshrl.u32 %v3694_v8, %v2916_v4  ;;  %v2924_v52 = vshll.u32 %v3694_v8, %v2915_v15  ;;  %v2925_v55 = vshrl.u32 %v3695_v34, %v2916_v4 }
 0x18b   :  { %v2927_v10 = vshll.u32 %v3695_v34, %v2915_v15  ;;  %v2928_v47 = vshrl.u32 %v3696_v50, %v2916_v4  ;;  %v2920_v51 = vor.u32 %v2919_v19, %v2918_v61  ;;  %v2930_v36 = vshll.u32 %v3696_v50, %v2915_v15 }
 0x18c   :  { %v2923_v31 = vor.u32 %v2922_v22, %v2921_v3  ;;  %v2931_v17 = vshrl.u32 %v3697_v28, %v2916_v4  ;;  %vm2752_vm8 = vc.u32 %v4599_v33, %v4602_v44  ;;  %v2753_v26 = vadd.s32 1, %v4603_v40 }
 0x18d   :  { %v2917_v25 = vshrl.u32 %v3692_v53, %v2916_v4  ;;  %v2926_v29 = vor.u32 %v2925_v55, %v2924_v52  ;;  %v2929_v32 = vor.u32 %v2928_v47, %v2927_v10  ;;  %vm2933_vm9 = vcmp.lt.s32.totalorder %v2914_v57, 1 }
 0x18e   :  { %v2932_v7 = vor.u32 %v2931_v17, %v2930_v36  ;;  %vm2935_vm10 = vcmp.lt.s32.totalorder %v2914_v57, 3  ;;  %v2754_v59 = vsel %vm2752_vm8, %v2753_v26, %v4603_v40  ;;  %vm2936_vm11 = vcmp.lt.s32.totalorder %v2914_v57, 4 }
 0x18f   :  { %v2937_v0 = vsel %vm2933_vm9, %v2917_v25, %v2920_v51  ;;  %v2941_v42 = vsel %vm2933_vm9, %v2920_v51, %v2923_v31  ;;  %v2755_v5 = vadd.s32 %v2754_v59, %v2750_v41  ;;  %v2938_v39 = vsel %vm2936_vm11, %v2926_v29, 2102212464 }
 0x190   :  { %v2942_v9 = vsel %vm2936_vm11, %v2929_v32, 920167782  ;;  %v2945_v21 = vsel %vm2933_vm9, %v2923_v31, %v2926_v29  ;;  %vm2934_vm12 = vcmp.lt.s32.totalorder %v2914_v57, 2  ;;  %v2939_v56 = vsel %vm2935_vm10, %v2923_v31, %v2938_v39 }
 0x191   :  { %v2943_v15 = vsel %vm2935_vm10, %v2926_v29, %v2942_v9  ;;  %v2946_v46 = vsel %vm2936_vm11, %v2932_v7, 1326507024  ;;  %v2756_v48 = vadd.s32 536870912, %v2755_v5  ;;  %v4621_v12 = vshrl.u32 %v2810_v13, 5 }
 0x192   :  { %v2944_v58 = vsel %vm2934_vm12, %v2941_v42, %v2943_v15  ;;  %v2947_v54 = vsel %vm2935_vm10, %v2929_v32, %v2946_v46  ;;  %v2940_v18 = vsel %vm2934_vm12, %v2937_v0, %v2939_v56  ;;  %v2812_v60 = vand.u32 31, %v2810_v13 }
 0x193   :  { %v2948_v35 = vsel %vm2934_vm12, %v2945_v21, %v2947_v54  ;;  %v4624_v4 = vmul.u32.u64.low %v4570_v14, %v2944_v58  ;;  %v4625_v49 = vmul.u32.u64.high %v4570_v14, %v2944_v58, %v4624_v4  ;;  %v4628_v11 = vshrl.u32 %v2756_v48, 30 }
 0x194   :  { %v4631_v20 = vmul.u32.u64.low %v4570_v14, %v2948_v35  ;;  %v4632_v37 = vmul.u32.u64.high %v4570_v14, %v2948_v35, %v4631_v20  ;;  %v4636_v57 = vshll.u32 %v2806_v27, 8  ;;  %v3008_v61 = vshrl.u32 %v3007_v38, 23 }
 0x195   :  { %v4642_v30 = vand.u32 8388607, %v3004_v16  ;;  %v2758_v40 = vshll.u32 %v4628_v11, 30  ;;  %v2956_v41 = vmul.u32 %v4570_v14, %v2940_v18  ;;  %v2813_v19 = vsub.s32 32, %v2812_v60 }
 0x196   :  { %vm2830_vm13 = vcmp.lt.s32.totalorder %v4621_v12, 1  ;;  %v2959_v13 = vadd.s32 1, %v4625_v49  ;;  %v2815_v23 = vshll.u32 %v3692_v53, %v2812_v60  ;;  %v2818_v27 = vshll.u32 %v3693_v45, %v2812_v60 }
 0x197   :  { %v2821_v3 = vshll.u32 %v3694_v8, %v2812_v60  ;;  %vm2831_vm14 = vcmp.lt.s32.totalorder %v4621_v12, 2  ;;  %v2759_v38 = vsub.s32 %v2755_v5, %v2758_v40  ;;  %vm2958_vm15 = vc.u32 %v4632_v37, %v4624_v4 }
 0x198   :  { %v2824_v22 = vshll.u32 %v3695_v34, %v2812_v60  ;;  %v2827_v14 = vshll.u32 %v3696_v50, %v2812_v60  ;;  %v2960_v52 = vsel %vm2958_vm15, %v2959_v13, %v4625_v49  ;;  %v2816_v55 = vshrl.u32 %v3693_v45, %v2813_v19 }
 0x199   :  { %v2819_v10 = vshrl.u32 %v3694_v8, %v2813_v19  ;;  %v2822_v47 = vshrl.u32 %v3695_v34, %v2813_v19  ;;  %v2761_v51 = vsub.s32 0, %v2759_v38  ;;  %v2961_v31 = vadd.s32 %v2960_v52, %v2956_v41 }
 0x19a   :  { %v2825_v36 = vshrl.u32 %v3696_v50, %v2813_v19  ;;  %v2828_v17 = vshrl.u32 %v3697_v28, %v2813_v19  ;;  %v2817_v26 = vor.u32 %v2816_v55, %v2815_v23  ;;  %vm2833_vm0 = vcmp.lt.s32.totalorder %v4621_v12, 4 }
 0x19b   :  { %v2820_v25 = vor.u32 %v2819_v10, %v2818_v27  ;;  %v2823_v29 = vor.u32 %v2822_v47, %v2821_v3  ;;  %v3132_v32 = vmin.u32 %v2761_v51, %v2759_v38  ;;  %v2962_v7 = vadd.s32 536870912, %v2961_v31 }
 0x19c   :  { %v2826_v59 = vor.u32 %v2825_v36, %v2824_v22  ;;  %v2829_v0 = vor.u32 %v2828_v17, %v2827_v14  ;;  %v2814_v42 = vshrl.u32 %v3692_v53, %v2813_v19  ;;  %vm2832_vm1 = vcmp.lt.s32.totalorder %v4621_v12, 3 }
 0x19d   :  { %v2835_v5 = vsel %vm2833_vm0, %v2823_v29, 2102212464  ;;  %v2838_v39 = vsel %vm2830_vm13, %v2817_v26, %v2820_v25  ;;  %v2763_v9 = vclz %v3132_v32  ;;  %v4667_v21 = vshrl.u32 %v2962_v7, 30 }
 0x19e   :  { %v2839_v56 = vsel %vm2833_vm0, %v2826_v59, 920167782  ;;  %v2842_v15 = vsel %vm2830_vm13, %v2820_v25, %v2823_v29  ;;  %v2834_v46 = vsel %vm2830_vm13, %v2814_v42, %v2817_v26  ;;  %v2843_v58 = vsel %vm2833_vm0, %v2829_v0, 1326507024 }
 0x19f   :  { %v2840_v48 = vsel %vm2832_vm1, %v2823_v29, %v2839_v56  ;;  %v3143_v54 = vadd.s32 4294967169, %v3008_v61  ;;  %v3133_v18 = vadd.s32 4294967294, %v2763_v9  ;;  %v2964_v35 = vshll.u32 %v4667_v21, 30 }
 0x1a0   :  { %v2841_v49 = vsel %vm2831_vm14, %v2838_v39, %v2840_v48  ;;  %v2844_v20 = vsel %vm2832_vm1, %v2826_v59, %v2843_v58  ;;  %v2836_v60 = vsel %vm2832_vm1, %v2820_v25, %v2835_v5  ;;  %v2751_v27 = vadd.s32 %v4602_v44, %v4599_v33 }
 0x1a1   :  { %v2845_v40 = vsel %vm2831_vm14, %v2842_v15, %v2844_v20  ;;  %v4679_v41 = vmul.u32.u64.low %v4636_v57, %v2841_v49  ;;  %v4680_v19 = vmul.u32.u64.high %v4636_v57, %v2841_v49, %v4679_v41  ;;  %vm3134_vm2 = vcmp.lt.s32.totalorder %v3133_v18, 0 }
 0x1a2   :  { %v4683_v13 = vsub.s32 %v2961_v31, %v2964_v35  ;;  %v4686_v61 = vmul.u32.u64.low %v4636_v57, %v2845_v40  ;;  %v4687_v23 = vmul.u32.u64.high %v4636_v57, %v2845_v40, %v4686_v61  ;;  %v2766_v3 = vsel %vm3134_vm2, 0, %v3133_v18 }
 0x1a3   :  { %v3014_v22 = vadd.s32 1, %v3143_v54  ;;  %v2767_v14 = vsub.s32 32, %v2766_v3  ;;  %v2771_v52 = vsub.s32 4294967266, %v2766_v3  ;;  %v2837_v10 = vsel %vm2831_vm14, %v2834_v46, %v2836_v60 }
 0x1a4   :  { %v2967_v55 = vsub.s32 0, %v4683_v13  ;;  %v2856_v47 = vadd.s32 1, %v4680_v19  ;;  %v3012_v51 = vor.u32 8388608, %v4642_v30  ;;  %v2768_v31 = vshll.u32 %v2759_v38, %v2766_v3 }
 0x1a5   :  { %vm3015_vm3 = vcmp.gt.s32.totalorder %v3014_v22, 0  ;;  %v2769_v36 = vshrl.u32 %v2751_v27, %v2767_v14  ;;  %v2772_v17 = vadd.s32 127, %v2771_v52  ;;  %v2853_v33 = vmul.u32 %v4636_v57, %v2837_v10 }
 0x1a6   :  { %v3140_v26 = vmin.u32 %v2967_v55, %v4683_v13  ;;  %vm2855_vm4 = vc.u32 %v4687_v23, %v4679_v41  ;;  %v3016_v44 = vsel %vm3015_vm3, %v3014_v22, 0  ;;  %vm2697_vm5 = vcmp.lt.s32.totalorder %v4545_v43, 0 }
 0x1a7   :  { %v2770_v25 = vor.u32 %v2769_v36, %v2768_v31  ;;  %v2773_v29 = vshll.u32 %v2772_v17, 23  ;;  %v2857_v32 = vsel %vm2855_vm4, %v2856_v47, %v4680_v19  ;;  %v3018_v7 = vand.u32 31, %v3016_v44 }
 0x1a8   :  { %v2969_v12 = vclz %v3140_v26  ;;  %v2858_v30 = vadd.s32 %v2857_v32, %v2853_v33  ;;  %vm4704_vm6 = vcmp.le.f32.partialorder %v2695_v62, 0.7853982  ;;  %v2957_v59 = vadd.s32 %v4624_v4, %v4632_v37 }
 0x1a9   :  { %v2774_v57 = vor.u32 4788187, %v2773_v29  ;;  %v4710_v42 = vshll.u32 %v3012_v51, 8  ;;  %v2777_v5 = vcvt.s32.f32 %v2770_v25  ;;  %v4712_v9 = vshrl.u32 %v3016_v44, 5 }
 0x1aa   :  { %v3141_v0 = vadd.s32 4294967294, %v2969_v12  ;;  %v2859_v39 = vadd.s32 536870912, %v2858_v30  ;;  %v3019_v56 = vsub.s32 32, %v3018_v7  ;;  %v3021_v46 = vshll.u32 %v3692_v53, %v3018_v7 }
 0x1ab   :  { %v2775_v15 = vand.u32 2147483647, %v2774_v57  ;;  %v3024_v62 = vshll.u32 %v3693_v45, %v3018_v7  ;;  %v3027_v4 = vshll.u32 %v3694_v8, %v3018_v7  ;;  %v3030_v49 = vshll.u32 %v3695_v34, %v3018_v7 }
 0x1ac   :  { %vm3142_vm7 = vcmp.lt.s32.totalorder %v3141_v0, 0  ;;  %v4716_v58 = vshrl.u32 %v2859_v39, 30  ;;  %v3022_v54 = vshrl.u32 %v3693_v45, %v3019_v56  ;;  %v3025_v40 = vshrl.u32 %v3694_v8, %v3019_v56 }
 0x1ad   :  { %v2972_v48 = vsel %vm3142_vm7, 0, %v3141_v0  ;;  %v2778_v37 = vmul.f32 %v2777_v5, %v2775_v15  ;;  %v3028_v19 = vshrl.u32 %v3695_v34, %v3019_v56  ;;  %v3031_v45 = vshrl.u32 %v3696_v50, %v3019_v56 }
 0x1ae   :  { %v2973_v18 = vsub.s32 32, %v2972_v48  ;;  %v2977_v35 = vsub.s32 4294967266, %v2972_v48  ;;  %v2974_v20 = vshll.u32 %v4683_v13, %v2972_v48  ;;  %v2861_v60 = vshll.u32 %v4716_v58, 30 }
 0x1af   :  { %v2779_v61 = vxor.u32 2147483648, %v2778_v37  ;;  %v3023_v14 = vor.u32 %v3022_v54, %v3021_v46  ;;  %v3026_v52 = vor.u32 %v3025_v40, %v3024_v62  ;;  %v3029_v55 = vor.u32 %v3028_v19, %v3027_v4 }
 0x1b0   :  { %v2975_v27 = vshrl.u32 %v2957_v59, %v2973_v18  ;;  %v2978_v3 = vadd.s32 127, %v2977_v35  ;;  %v4726_v22 = vsub.s32 %v2858_v30, %v2861_v60  ;;  %v3033_v51 = vshll.u32 %v3696_v50, %v3018_v7 }
 0x1b1   :  { %v2780_v10 = vsel %vm2697_vm5, %v2779_v61, %v2778_v37  ;;  %vm2903_vm8 = vcmp.lt.s32.totalorder %v4554_v6, 0  ;;  %v3032_v31 = vor.u32 %v3031_v45, %v3030_v49  ;;  %v3034_v36 = vshrl.u32 %v3697_v28, %v3019_v56 }
 0x1b2   :  { %v2976_v13 = vor.u32 %v2975_v27, %v2974_v20  ;;  %v2979_v47 = vshll.u32 %v2978_v3, 23  ;;  %v2783_v8 = vsel %vm4704_vm6, %v4545_v43, %v2780_v10  ;;  %v2864_v34 = vsub.s32 0, %v4726_v22 }
 0x1b3   :  { %3599 = vcosq.f32 %v2783_v8  ;;  %vm4739_vm9 = vcmp.le.f32.partialorder %v2901_v2, 0.7853982  ;;  %v3020_v50 = vshrl.u32 %v3692_v53, %v3019_v56  ;;  %vm3036_vm10 = vcmp.lt.s32.totalorder %v4712_v9, 1 }
 0x1b4   :  { %v2980_v26 = vor.u32 4788187, %v2979_v47  ;;  %v2983_v33 = vcvt.s32.f32 %v2976_v13  ;;  %v3136_v44 = vmin.u32 %v2864_v34, %v4726_v22  ;;  %v3035_v25 = vor.u32 %v3034_v36, %v3033_v51 }
 0x1b5   :  { %vm3037_vm11 = vcmp.lt.s32.totalorder %v4712_v9, 2  ;;  %vm3038_vm12 = vcmp.lt.s32.totalorder %v4712_v9, 3  ;;  %vm3039_vm13 = vcmp.lt.s32.totalorder %v4712_v9, 4  ;;  %v3044_v2 = vsel %vm3036_vm10, %v3023_v14, %v3026_v52 }
 0x1b6   :  { %v2981_v29 = vand.u32 2147483647, %v2980_v26  ;;  %v2866_v28 = vclz %v3136_v44  ;;  %v3041_v12 = vsel %vm3039_vm13, %v3029_v55, 2102212464  ;;  %v3045_v32 = vsel %vm3039_vm13, %v3032_v31, 920167782 }
 0x1b7   :  { %v3048_v30 = vsel %vm3036_vm10, %v3026_v52, %v3029_v55  ;;  %v3040_v53 = vsel %vm3036_vm10, %v3020_v50, %v3023_v14  ;;  %v3046_v57 = vsel %vm3038_vm12, %v3029_v55, %v3045_v32  ;;  %v3049_v59 = vsel %vm3039_vm13, %v3035_v25, 1326507024 }
 0x1b8   :  { %v2984_v7 = vmul.f32 %v2983_v33, %v2981_v29  ;;  %v3137_v0 = vadd.s32 4294967294, %v2866_v28  ;;  %v3042_v5 = vsel %vm3038_vm12, %v3026_v52, %v3041_v12  ;;  %v3047_v39 = vsel %vm3037_vm11, %v3044_v2, %v3046_v57 }
 0x1b9   :  { %v3050_v56 = vsel %vm3038_vm12, %v3032_v31, %v3049_v59  ;;  %v4754_v62 = vmul.u32.u64.low %v4710_v42, %v3047_v39  ;;  %v4755_v48 = vmul.u32.u64.high %v4710_v42, %v3047_v39, %v4754_v62  ;;  %3601 = vsinq.f32 %v2783_v8 }
 0x1ba   :  { %v2985_v15 = vxor.u32 2147483648, %v2984_v7  ;;  %v3051_v46 = vsel %vm3037_vm11, %v3048_v30, %v3050_v56  ;;  %vm3138_vm14 = vcmp.lt.s32.totalorder %v3137_v0, 0  ;;  %v2854_v18 = vadd.s32 %v4679_v41, %v4687_v23 }
 0x1bb   :  { %v4759_v54 = vmul.u32.u64.low %v4710_v42, %v3051_v46  ;;  %v4760_v4 = vmul.u32.u64.high %v4710_v42, %v3051_v46, %v4759_v54  ;;  %v2869_v35 = vsel %vm3138_vm14, 0, %v3137_v0  ;;  %v2781_v49 = vsub.s32 4, %v4628_v11 }
 0x1bc   :  { %v2986_v37 = vsel %vm2903_vm8, %v2985_v15, %v2984_v7  ;;  %v2870_v60 = vsub.s32 32, %v2869_v35  ;;  %v2874_v40 = vsub.s32 4294967266, %v2869_v35  ;;  %v3043_v19 = vsel %vm3037_vm11, %v3040_v53, %v3042_v5 }
 0x1bd   :  { %v2989_v20 = vsel %vm4739_vm9, %v4554_v6, %v2986_v37  ;;  %v3600_v61 = vpop.eup %3599  ;;  %v3062_v27 = vadd.s32 1, %v4755_v48  ;;  %v2871_v3 = vshll.u32 %v4726_v22, %v2869_v35  ;;  %v3059_v45 = vmul.u32 %v4710_v42, %v3043_v19 }
 0x1be   :  { %3603 = vcosq.f32 %v2989_v20  ;;  %v2872_v41 = vshrl.u32 %v2854_v18, %v2870_v60  ;;  %v2875_v23 = vadd.s32 127, %v2874_v40  ;;  %vm3061_vm15 = vc.u32 %v4760_v4, %v4754_v62 }
 0x1bf   :  { %3605 = vsinq.f32 %v2989_v20  ;;  %v2782_v14 = vsel %vm2697_vm5, %v2781_v49, %v4628_v11  ;;  %v2987_v9 = vsub.s32 4, %v4667_v21  ;;  %v3063_v10 = vsel %vm3061_vm15, %v3062_v27, %v4755_v48 }
 0x1c0   :  { %v2873_v52 = vor.u32 %v2872_v41, %v2871_v3  ;;  %v2876_v55 = vshll.u32 %v2875_v23, 23  ;;  %v3064_v13 = vadd.s32 %v3063_v10, %v3059_v45  ;;  %v2784_v22 = vsel %vm4704_vm6, 0, %v2782_v14 }
 0x1c1   :  { %v2988_v42 = vsel %vm2903_vm8, %v2987_v9, %v4667_v21  ;;  %v2788_v36 = vand.u32 3, %v2784_v22  ;;  %v2794_v25 = vxor.u32 2147483648, %v3600_v61  ;;  %vm4794_vm0 = vcmp.le.f32.partialorder %v2798_v24, 0.7853982 }
 0x1c2   :  { %v2877_v47 = vor.u32 4788187, %v2876_v55  ;;  %v3065_v51 = vadd.s32 536870912, %v3064_v13  ;;  %v2880_v31 = vcvt.s32.f32 %v2873_v52  ;;  %v2990_v50 = vsel %vm4739_vm9, 0, %v2988_v42 }
 0x1c3   :  { %v3602_v8 = vpop.eup %3601  ;;  %vm2800_vm1 = vcmp.lt.s32.totalorder %v4549_v63, 0  ;;  %vm2790_vm2 = vcmp.eq.s32.totalorder %v2788_v36, 0  ;;  %vm2793_vm3 = vcmp.eq.s32.totalorder %v2788_v36, 2  ;;  %v2994_v17 = vand.u32 3, %v2990_v50 }
 0x1c4   :  { %v2878_v34 = vand.u32 2147483647, %v2877_v47  ;;  %v4787_v11 = vshrl.u32 %v3065_v51, 30  ;;  %v2791_v38 = vxor.u32 2147483648, %v3602_v8  ;;  %v2884_v7 = vsub.s32 4, %v4716_v58 }
 0x1c5   :  { %v2795_v59 = vsel %vm2793_vm3, %v2794_v25, %v3602_v8  ;;  %vm2789_vm4 = vcmp.lt.s32.totalorder %v2788_v36, 2  ;;  %vm2996_vm5 = vcmp.eq.s32.totalorder %v2994_v17, 0  ;;  %vm2999_vm6 = vcmp.eq.s32.totalorder %v2994_v17, 2 }
 0x1c6   :  { %v2881_v26 = vmul.f32 %v2880_v31, %v2878_v34  ;;  %v3067_v44 = vshll.u32 %v4787_v11, 30  ;;  %v2792_v57 = vsel %vm2790_vm2, %v3600_v61, %v2791_v38  ;;  %v2885_v15 = vsel %vm2800_vm1, %v2884_v7, %v4716_v58 }
 0x1c7   :  { %v2796_v5 = vsel %vm2789_vm4, %v2792_v57, %v2795_v59  ;;  %vm2787_vm7 = vweird.f32 %v4545_v43  ;;  %vm2995_vm8 = vcmp.lt.s32.totalorder %v2994_v17, 2  ;;  %v2887_v35 = vsel %vm4794_vm0, 0, %v2885_v15 }
 0x1c8   :  { %v3604_v33 = vpop.eup %3603  ;;  %v2882_v2 = vxor.u32 2147483648, %v2881_v26  ;;  %v3068_v28 = vsub.s32 %v3064_v13, %v3067_v44  ;;  %v2797_v37 = vsel %vm2787_vm7, nan, %v2796_v5  ;;  %vm2993_vm10 = vweird.f32 %v4554_v6 }
 0x1c9   :  { %v3606_v29 = vpop.eup %3605  ;;  %v3000_v30 = vxor.u32 2147483648, %v3604_v33  ;;  %v2891_v19 = vand.u32 3, %v2887_v35  ;;  %v3060_v43 = vadd.s32 %v4754_v62, %v4760_v4  ;;  %vm2890_vm14 = vweird.f32 %v4549_v63 }
 0x1ca   :  { %v2883_v12 = vsel %vm2800_vm1, %v2882_v2, %v2881_v26  ;;  %v2997_v32 = vxor.u32 2147483648, %v3606_v29  ;;  %v3070_v53 = vsub.s32 0, %v3068_v28  ;;  %vm3006_vm15 = vcmp.lt.s32.totalorder %v4559_v1, 0 }
 0x1cb   :  { %v2886_v24 = vsel %vm4794_vm0, %v4549_v63, %v2883_v12  ;;  %v3001_v56 = vsel %vm2999_vm6, %v3000_v30, %v3606_v29  ;;  %vm2896_vm11 = vcmp.eq.s32.totalorder %v2891_v19, 2  ;;  %vm2893_vm12 = vcmp.eq.s32.totalorder %v2891_v19, 0 }
 0x1cc   :  { %3607 = vcosq.f32 %v2886_v24  ;;  %v3144_v0 = vmin.u32 %v3070_v53, %v3068_v28  ;;  %v2998_v39 = vsel %vm2996_vm5, %v3604_v33, %v2997_v32  ;;  %vm2892_vm13 = vcmp.lt.s32.totalorder %v2891_v19, 2 }
 0x1cd   :  { %3609 = vsinq.f32 %v2886_v24  ;;  %v3002_v18 = vsel %vm2995_vm8, %v2998_v39, %v3001_v56  ;;  %vm3005_vm0 = vcmp.le.f32.partialorder %v3004_v16, 0.7853982  ;;  %v3090_v50 = vsub.s32 4, %v4787_v11 }
 0x1ce   :  { %v3072_v46 = vclz %v3144_v0  ;;  %v3003_v58 = vsel %vm2993_vm10, nan, %v3002_v18  ;;  %vm3096_vm4 = vweird.f32 %v4559_v1 }
 0x1cf   :  { %v3091_v63 = vsel %vm3006_vm15, %v3090_v50, %v4787_v11 }
 0x1d0   :  { %v3145_v48 = vadd.s32 4294967294, %v3072_v46  ;;  %v3093_v44 = vsel %vm3005_vm0, 0, %v3091_v63 }
 0x1d1   :  { %v3097_v38 = vand.u32 3, %v3093_v44 }
 0x1d2   :  { %v2043_v54 = vpop.f32.mrb[2].mxu0  ;;  %vm3146_vm9 = vcmp.lt.s32.totalorder %v3145_v48, 0 }
 0x1d3   :  { %v3107_v49 = vmul.f32 %v2797_v37, %v2043_v54  ;;  %v2045_v20 = vpop.f32.mrb[3].mxu0  ;;  %v3075_v60 = vsel %vm3146_vm9, 0, %v3145_v48  ;;  %vm3102_vm1 = vcmp.eq.s32.totalorder %v3097_v38, 2  ;;  %vm3099_vm2 = vcmp.eq.s32.totalorder %v3097_v38, 0 }
 0x1d4   :  { %v2690_v40 = vpop.f32.mrb[2].mxu1  ;;  %v3076_v61 = vsub.s32 32, %v3075_v60  ;;  %v3080_v27 = vsub.s32 4294967266, %v3075_v60  ;;  %v3077_v14 = vshll.u32 %v3068_v28, %v3075_v60  ;;  %vm3098_vm3 = vcmp.lt.s32.totalorder %v3097_v38, 2 }
 0x1d5   :  { %3111 = vst [vmem:[#allocation7] sm:$0xff] %v3107_v49  ;;  %v3109_v3 = vmul.f32 %v3003_v58, %v2690_v40  ;;  %v2692_v41 = vpop.f32.mrb[3].mxu1 }
 0x1d6   :  { %v3608_v23 = vpop.eup %3607  ;;  %v3078_v9 = vshrl.u32 %v3060_v43, %v3076_v61  ;;  %v3081_v52 = vadd.s32 127, %v3080_v27 }
 0x1d7   :  { %v3610_v45 = vpop.eup %3609  ;;  %3113 = vst [vmem:[#allocation7 + $0x10] sm:$0xff] %v3109_v3  ;;  %v2897_v55 = vxor.u32 2147483648, %v3608_v23 }
 0x1d8   :  { %v2894_v6 = vxor.u32 2147483648, %v3610_v45  ;;  %v3079_v10 = vor.u32 %v3078_v9, %v3077_v14  ;;  %v3082_v13 = vshll.u32 %v3081_v52, 23 }
 0x1d9   :  { %v2898_v47 = vsel %vm2896_vm11, %v2897_v55, %v3610_v45 }
 0x1da   :  { %v2895_v22 = vsel %vm2893_vm12, %v3608_v23, %v2894_v6  ;;  %v3083_v62 = vor.u32 4788187, %v3082_v13  ;;  %v3086_v8 = vcvt.s32.f32 %v3079_v10 }
 0x1db   :  { %v2899_v4 = vsel %vm2892_vm13, %v2895_v22, %v2898_v47 }
 0x1dc   :  { %v2900_v51 = vsel %vm2890_vm14, nan, %v2899_v4  ;;  %v3084_v42 = vand.u32 2147483647, %v3083_v62 }
 0x1dd   :  { %v3108_v34 = vmul.f32 %v2900_v51, %v2045_v20 }
 0x1de   :  { %v3087_v31 = vmul.f32 %v3086_v8, %v3084_v42 }
 0x1df   :  { %3112 = vst [vmem:[#allocation7 + $0x8] sm:$0xff] %v3108_v34 }
 0x1e0   :  { %v3088_v36 = vxor.u32 2147483648, %v3087_v31 }
 0x1e2   :  { %v3089_v26 = vsel %vm3006_vm15, %v3088_v36, %v3087_v31 }
 0x1e3   :  { %v3092_v33 = vsel %vm3005_vm0, %v4559_v1, %v3089_v26 }
 0x1e4   :  { %3611 = vcosq.f32 %v3092_v33 }
 0x1e5   :  { %3613 = vsinq.f32 %v3092_v33 }
 0x1ee   :  { %v3612_v25 = vpop.eup %3611 }
 0x1ef   :  { %v3614_v29 = vpop.eup %3613  ;;  %v3103_v21 = vxor.u32 2147483648, %v3612_v25 }
 0x1f0   :  { %v3100_v2 = vxor.u32 2147483648, %v3614_v29 }
 0x1f1   :  { %v3104_v28 = vsel %vm3102_vm1, %v3103_v21, %v3614_v29 }
 0x1f2   :  { %v3101_v16 = vsel %vm3099_vm2, %v3612_v25, %v3100_v2 }
 0x1f3   :  { %v3105_v17 = vsel %vm3098_vm3, %v3101_v16, %v3104_v28 }
 0x1f4   :  { %v3106_v12 = vsel %vm3096_vm4, nan, %v3105_v17 }
 0x1f5   :  { %v3110_v32 = vmul.f32 %v3106_v12, %v2692_v41 }
 0x1f7   :  { %3114 = vst [vmem:[#allocation7 + $0x18] sm:$0xff] %v3110_v32 }
 0x1f8   :  { %3670 = shalt.err (!%p3667_p6)
}
 0x1f9   :  { %s3671_s10 = scalar_lea.hbm %s4836_s2, 512 }
 0x1fa   :  { %p3672_p7 = scmp.ne.s32.totalorder %s4836_s2, %s3671_s10  ;;  %p3675_p8 = scmp.lt.u32.totalorder %s3671_s10, %s4836_s2 }
 0x1fc   :  { %p3677_p9 = pnand %p3675_p8, %p3672_p7 }
 0x1fe   :  { %3680 = shalt.err (!%p3677_p9)
}
 0x1ff   :  { %3124 = dma.vmem_to_hbm [thread:$0]  %s3122_s6, 512, %s4836_s2, [#allocation4]  }
 0x200   :  { %3685 = dma.done.wait [#allocation4], 512  }
 0x201   :  { %3686 = vsyncadd [#allocation4], 4294966784 }
 0x202   :  { %3128 = vsyncpa [#allocation3], 1 }
 0x203   :  { %3129 = vsyncpa [#allocation6], 1 }
 0x204   :  { %3130 = vsyncpa [#allocation4], 1 }

</bundles_post_ra>
